<compile_context>
chip_gen: v6e
topology: v6e:2x2x1
jax: 0.10.0
libtpu: 0.0.40
codegen_flags: <defaults>
</compile_context>

<pallas_src>
import functools

import jax
import jax.numpy as jnp
from jax import lax
from jax.experimental import pallas as pl
from jax.experimental.pallas import tpu as pltpu


# ---------------------------------------------------------------------------
# helpers
# ---------------------------------------------------------------------------
def _vmem_limit_bytes():
    """Generation-aware scoped-VMEM budget (leave headroom for compiler scratch)."""
    cap = 128 * 1024 * 1024
    try:
        info = pltpu.get_tpu_info()
        cap = int(getattr(info, "vmem_capacity_bytes", cap))
    except Exception:
        pass
    # ~3/4 of physical, capped at 96 MiB (v5e/v6e) -> ~48 MiB on v7x's 64 MiB.
    return int(max(32 * 1024 * 1024, min(cap * 3 // 4, 96 * 1024 * 1024)))


def _bf16_softmax_ok():
    """bf16 VPU/EUP exist on v6e/v7x; on v5e keep softmax math in f32."""
    try:
        kind = jax.devices()[0].device_kind.lower()
    except Exception:
        return False
    return any(tag in kind for tag in ("v6", "v7", "tpu7"))


def _pick_query_tile(n, c, c4, budget):
    """Largest query tile whose working set fits the VMEM budget (prefer tq=N, nq=1)."""
    resident = (4 * c * n * 4                 # x + out blocks (f32, double-buffered)
                + c4 * n * 2                  # K scratch (bf16)
                + n * 4                       # colsum scratch
                + 2 * (2 * c * c * 2 + c4 * c * 2 + 2 * c * 4))   # weights (double-buffered)

    def fits(tq):
        work = 3 * tq * n * 4 + c * tq * 4 + c4 * tq * 2   # energy/softmax temps + v_q + k_q
        return resident + work + (2 << 20) <= budget

    cands = [n] + [t for t in (n // 2, n // 4, n // 8, n // 16)
                   if t >= 128 and t % 128 == 0 and n % t == 0]
    for t in cands:
        if fits(t):
            return t
    return cands[-1]


# ---------------------------------------------------------------------------
# fused SA_Layer kernel
# ---------------------------------------------------------------------------
def _sa_fused_kernel(x_ref, wqk_ref, wv_ref, bv_ref, wt_ref, bt_ref,
                     o_ref, k_scr, colsum_scr, *, tq, bf16_softmax):
    # x_ref : (C, N)  full batch slice, resident across query tiles
    # wqk   : (C4, C) bf16 tied q/k weight; wv/wt: (C, C) bf16; bv/bt: (C, 1) f32
    # o_ref : (C, N)  f32 output block; doubles as the V@S accumulator (index const over q)
    q = pl.program_id(1)
    nq = pl.num_programs(1)
    n = x_ref.shape[-1]

    @pl.when(q == 0)
    def _init():
        xb = x_ref[...].astype(jnp.bfloat16)
        k_scr[...] = jnp.dot(wqk_ref[...], xb,
                             preferred_element_type=jnp.float32).astype(jnp.bfloat16)
        colsum_scr[...] = jnp.zeros_like(colsum_scr)
        o_ref[...] = jnp.zeros_like(o_ref)

    # ---- per query-tile work (lane-dim slices of the resident blocks) -------
    if tq == n:
        xq = x_ref[...].astype(jnp.bfloat16)                      # (C, N)
        k_q = k_scr[...]                                          # (C4, N)
    else:
        q_start = q * tq
        if tq % 128 == 0:
            q_start = pl.multiple_of(q_start, 128)
        xq = x_ref[:, pl.ds(q_start, tq)].astype(jnp.bfloat16)    # (C, tq)
        k_q = k_scr[:, pl.ds(q_start, tq)]                        # (C4, tq)

    v_q = (jnp.dot(wv_ref[...], xq, preferred_element_type=jnp.float32)
           + bv_ref[...]).astype(jnp.bfloat16)                    # (C, tq)

    # energy[i, j] = sum_c K[c, q_tile_i] * K[c, j]  -- transposed-LHS contraction, no
    # materialized K^T (q_conv.weight == k_conv.weight, so Q == K).
    energy = lax.dot_general(k_q, k_scr[...], (((0,), (0,)), ((), ())),
                             preferred_element_type=jnp.float32)  # (tq, N)

    m = jnp.max(energy, axis=-1, keepdims=True)
    if bf16_softmax:
        # v6e/v7x: bf16 exp / normalize; row-sum, reciprocal and colsum stay f32.
        e = jnp.exp((energy - m).astype(jnp.bfloat16))
        inv = pl.reciprocal(jnp.sum(e, axis=-1, keepdims=True, dtype=jnp.float32),
                            approx=True)
        s = e * inv.astype(jnp.bfloat16)                          # (tq, N) bf16
        col = jnp.sum(s, axis=0, keepdims=True, dtype=jnp.float32)
    else:
        # v5e: no bf16 VPU/EUP -> keep softmax math in f32, cast only for the MXU.
        e = jnp.exp(energy - m)
        s_f32 = e * pl.reciprocal(jnp.sum(e, axis=-1, keepdims=True), approx=True)
        col = jnp.sum(s_f32, axis=0, keepdims=True)
        s = s_f32.astype(jnp.bfloat16)

    colsum_scr[...] += col                                        # sum over the QUERY dim
    o_ref[...] += jnp.dot(v_q, s, preferred_element_type=jnp.float32)   # partial V @ S

    @pl.when(q == nq - 1)
    def _finalize():
        # Exact division for the renorm (runs once per batch; keeps finalize precise).
        x_r = o_ref[...] / (1e-9 + colsum_scr[...])
        z = (x_ref[...] - x_r).astype(jnp.bfloat16)
        y = jnp.dot(wt_ref[...], z, preferred_element_type=jnp.float32) + bt_ref[...]
        o_ref[...] = x_ref[...] + jnp.maximum(y, 0.0)             # residual + ReLU


def sa_layer_forward(params, x, bn_eps=1e-5):
    """SA_Layer forward.  x: (B, C, N) float32 -> (B, C, N) float32."""
    B, C, N = x.shape
    C4 = params["wqk"].shape[0]
    x = x.astype(jnp.float32)

    # TODO(synk): BatchNorm1d is evaluated with running statistics (inference mode);
    # training-mode batch statistics are not implemented.
    scale = params["bn_gamma"] / jnp.sqrt(params["bn_var"] + bn_eps)
    wt = (scale[:, None] * params["wt"]).astype(jnp.bfloat16)
    bt = (scale * (params["bt"] - params["bn_mean"]) + params["bn_beta"]).reshape(C, 1)
    bt = bt.astype(jnp.float32)

    wqk = params["wqk"].astype(jnp.bfloat16)
    wv = params["wv"].astype(jnp.bfloat16)
    bv = params["bv"].reshape(C, 1).astype(jnp.float32)

    vmem_limit = _vmem_limit_bytes()
    tq = _pick_query_tile(N, C, C4, vmem_limit)
    assert N % tq == 0, f"query tile {tq} must divide N={N}"
    nq = N // tq

    kernel = functools.partial(_sa_fused_kernel, tq=tq,
                               bf16_softmax=_bf16_softmax_ok())

    return pl.pallas_call(
        kernel,
        out_shape=jax.ShapeDtypeStruct((B, C, N), jnp.float32),
        grid=(B, nq),
        in_specs=[
            pl.BlockSpec((None, C, N), lambda b, q: (b, 0, 0)),   # x (resident per batch)
            pl.BlockSpec((C4, C), lambda b, q: (0, 0)),           # tied q/k weight
            pl.BlockSpec((C, C), lambda b, q: (0, 0)),            # v_conv weight
            pl.BlockSpec((C, 1), lambda b, q: (0, 0)),            # v_conv bias
            pl.BlockSpec((C, C), lambda b, q: (0, 0)),            # trans_conv weight (BN folded)
            pl.BlockSpec((C, 1), lambda b, q: (0, 0)),            # trans_conv bias  (BN folded)
        ],
        out_specs=pl.BlockSpec((None, C, N), lambda b, q: (b, 0, 0)),
        scratch_shapes=[
            pltpu.VMEM((C4, N), jnp.bfloat16),   # K  (single scratch; no K^T, no acc slab)
            pltpu.VMEM((1, N), jnp.float32),     # per-key sums over the query dim
        ],
        compiler_params=pltpu.CompilerParams(
            dimension_semantics=("parallel", "arbitrary"),
            vmem_limit_bytes=vmem_limit,
        ),
    )(x, wqk, wv, bv, wt, bt)


# ---------------------------------------------------------------------------
# pure-JAX reference (f32) for a numerical sanity check
# ---------------------------------------------------------------------------
def sa_layer_reference(params, x, bn_eps=1e-5):
    xk = jnp.einsum("oc,bcn->bon", params["wqk"], x)                  # (B, C4, N)
    xq = jnp.transpose(xk, (0, 2, 1))                                 # (B, N, C4)
    xv = jnp.einsum("oc,bcn->bon", params["wv"], x) + params["bv"][None, :, None]
    energy = jnp.einsum("bnc,bcm->bnm", xq, xk)                       # (B, N, N)
    attn = jax.nn.softmax(energy, axis=-1)
    attn = attn / (1e-9 + jnp.sum(attn, axis=1, keepdims=True))
    x_r = jnp.einsum("bcn,bnm->bcm", xv, attn)
    z = x - x_r
    y = jnp.einsum("oc,bcn->bon", params["wt"], z) + params["bt"][None, :, None]
    scale = params["bn_gamma"] / jnp.sqrt(params["bn_var"] + bn_eps)
    y = scale[None, :, None] * (y - params["bn_mean"][None, :, None]) \
        + params["bn_beta"][None, :, None]
    return x + jnp.maximum(y, 0.0)


# ---------------------------------------------------------------------------
# deterministic parameter init
# ---------------------------------------------------------------------------
def init_sa_layer_params(key, channels):
    c4 = channels // 4
    ks = jax.random.split(key, 9)

    def conv_w(k, cout, cin):
        return jax.random.normal(k, (cout, cin), jnp.float32) * (cin ** -0.5)

    return {
        # q_conv.weight == k_conv.weight (tied, bias-free), exactly as in the PyTorch module
        "wqk": conv_w(ks[0], c4, channels),
        "wv": conv_w(ks[1], channels, channels),
        "bv": 0.02 * jax.random.normal(ks[2], (channels,), jnp.float32),
        "wt": conv_w(ks[3], channels, channels),
        "bt": 0.02 * jax.random.normal(ks[4], (channels,), jnp.float32),
        "bn_gamma": 1.0 + 0.1 * jax.random.normal(ks[5], (channels,), jnp.float32),
        "bn_beta": 0.1 * jax.random.normal(ks[6], (channels,), jnp.float32),
        "bn_mean": 0.1 * jax.random.normal(ks[7], (channels,), jnp.float32),
        "bn_var": 1.0 + 0.1 * jnp.abs(jax.random.normal(ks[8], (channels,), jnp.float32)),
    }


# ---------------------------------------------------------------------------
if __name__ == "__main__":
    B, C, N = 2, 64, 256  # small shapes: batch=2, channels=64, points=256
    key = jax.random.PRNGKey(0)
    pkey, xkey = jax.random.split(key)
    params = init_sa_layer_params(pkey, C)
    x = jax.random.normal(xkey, (B, C, N), jnp.float32)

    fwd = jax.jit(sa_layer_forward)
    out = fwd(params, x)
    jax.block_until_ready(out)

    assert out.shape == (B, C, N) and out.dtype == jnp.float32
    assert bool(jnp.all(jnp.isfinite(out)))

    ref = sa_layer_reference(params, x)
    err = float(jnp.max(jnp.abs(out - ref)))
    ref_scale = float(jnp.max(jnp.abs(ref))) + 1e-6
    # bf16 MXU operands (f32 accumulation) -> loose tolerance vs the f32 reference
    assert err / ref_scale < 0.15, f"kernel/reference mismatch: max_err={err}, scale={ref_scale}"

    print("KERNEL_OK")
</pallas_src>

<mosaic_0001>
module attributes {stable_mosaic.version = 11 : i64} {
  func.func @_sa_fused_kernel(%arg0: i32, %arg1: i32, %arg2: memref<1x64x256xf32, #tpu.memory_space<vmem>>, %arg3: memref<16x64xbf16, #tpu.memory_space<vmem>>, %arg4: memref<64x64xbf16, #tpu.memory_space<vmem>>, %arg5: memref<64x1xf32, #tpu.memory_space<vmem>>, %arg6: memref<64x64xbf16, #tpu.memory_space<vmem>>, %arg7: memref<64x1xf32, #tpu.memory_space<vmem>>, %arg8: memref<1x64x256xf32, #tpu.memory_space<vmem>>, %arg9: memref<16x256xbf16, #tpu.memory_space<vmem>>, %arg10: memref<1x256xf32, #tpu.memory_space<vmem>>) attributes {dimension_semantics = [#tpu.dimension_semantics<parallel>, #tpu.dimension_semantics<arbitrary>], iteration_bounds = array<i64: 2, 1>, scalar_prefetch = 0 : i64, scratch_operands = 2 : i64, tpu.core_type = #tpu.core_type<tc>, window_params = [{transform_indices = @transform_0, window_bounds = array<i64: 1, 64, 256>}, {pipeline_mode = #tpu.pipeline_mode<synchronous>, transform_indices = @transform_1, window_bounds = array<i64: 16, 64>}, {pipeline_mode = #tpu.pipeline_mode<synchronous>, transform_indices = @transform_2, window_bounds = array<i64: 64, 64>}, {pipeline_mode = #tpu.pipeline_mode<synchronous>, transform_indices = @transform_3, window_bounds = array<i64: 64, 1>}, {pipeline_mode = #tpu.pipeline_mode<synchronous>, transform_indices = @transform_4, window_bounds = array<i64: 64, 64>}, {pipeline_mode = #tpu.pipeline_mode<synchronous>, transform_indices = @transform_5, window_bounds = array<i64: 64, 1>}, {transform_indices = @transform_6, window_bounds = array<i64: 1, 64, 256>}]} {
    %c0_i32 = arith.constant 0 : i32
    %0 = arith.cmpi eq, %arg1, %c0_i32 : i32
    %1 = arith.extui %0 : i1 to i32
    %c0_i32_0 = arith.constant 0 : i32
    %2 = arith.cmpi ne, %1, %c0_i32_0 : i32
    scf.if %2 {
      %c0_28 = arith.constant 0 : index
      %c0_29 = arith.constant 0 : index
      %c0_30 = arith.constant 0 : index
      %41 = vector.load %arg2[%c0_28, %c0_29, %c0_30] : memref<1x64x256xf32, #tpu.memory_space<vmem>>, vector<1x64x256xf32>
      %42 = vector.shape_cast %41 : vector<1x64x256xf32> to vector<64x256xf32>
      %43 = arith.truncf %42 : vector<64x256xf32> to vector<64x256xbf16>
      %c0_31 = arith.constant 0 : index
      %c0_32 = arith.constant 0 : index
      %44 = vector.load %arg3[%c0_31, %c0_32] : memref<16x64xbf16, #tpu.memory_space<vmem>>, vector<16x64xbf16>
      %cst_33 = arith.constant dense<0.000000e+00> : vector<16x256xf32>
      %45 = tpu.matmul %44, %43, %cst_33 {dimension_numbers = #tpu.dot_dimension_numbers<[1], [0], [0], [1], [0, 0, 1, 1], [], []>} : vector<16x64xbf16>, vector<64x256xbf16>, vector<16x256xf32> -> vector<16x256xf32>
      %46 = arith.truncf %45 : vector<16x256xf32> to vector<16x256xbf16>
      %c0_34 = arith.constant 0 : index
      %c0_35 = arith.constant 0 : index
      %47 = vector.load %arg9[%c0_34, %c0_35] : memref<16x256xbf16, #tpu.memory_space<vmem>>, vector<16x256xbf16>
      tpu.vector_store %arg9[%c0_34, %c0_35], %46 {strides = array<i32>} : memref<16x256xbf16, #tpu.memory_space<vmem>>, vector<16x256xbf16>,
      %cst_36 = arith.constant 0.000000e+00 : f32
      %48 = vector.broadcast %cst_36 : f32 to vector<1x256xf32>
      %c0_37 = arith.constant 0 : index
      %c0_38 = arith.constant 0 : index
      %49 = vector.load %arg10[%c0_37, %c0_38] : memref<1x256xf32, #tpu.memory_space<vmem>>, vector<1x256xf32>
      tpu.vector_store %arg10[%c0_37, %c0_38], %48 {strides = array<i32>} : memref<1x256xf32, #tpu.memory_space<vmem>>, vector<1x256xf32>,
      %cst_39 = arith.constant 0.000000e+00 : f32
      %50 = vector.broadcast %cst_39 : f32 to vector<64x256xf32>
      %c0_40 = arith.constant 0 : index
      %c0_41 = arith.constant 0 : index
      %c0_42 = arith.constant 0 : index
      %51 = vector.load %arg8[%c0_40, %c0_41, %c0_42] : memref<1x64x256xf32, #tpu.memory_space<vmem>>, vector<1x64x256xf32>
      %52 = vector.shape_cast %51 : vector<1x64x256xf32> to vector<64x256xf32>
      %53 = vector.shape_cast %50 : vector<64x256xf32> to vector<1x64x256xf32>
      tpu.vector_store %arg8[%c0_40, %c0_41, %c0_42], %53 {strides = array<i32>} : memref<1x64x256xf32, #tpu.memory_space<vmem>>, vector<1x64x256xf32>,
    } else {
    }
    %c0 = arith.constant 0 : index
    %c0_1 = arith.constant 0 : index
    %c0_2 = arith.constant 0 : index
    %3 = vector.load %arg2[%c0, %c0_1, %c0_2] : memref<1x64x256xf32, #tpu.memory_space<vmem>>, vector<1x64x256xf32>
    %4 = vector.shape_cast %3 : vector<1x64x256xf32> to vector<64x256xf32>
    %5 = arith.truncf %4 : vector<64x256xf32> to vector<64x256xbf16>
    %c0_3 = arith.constant 0 : index
    %c0_4 = arith.constant 0 : index
    %6 = vector.load %arg9[%c0_3, %c0_4] : memref<16x256xbf16, #tpu.memory_space<vmem>>, vector<16x256xbf16>
    %c0_5 = arith.constant 0 : index
    %c0_6 = arith.constant 0 : index
    %7 = vector.load %arg4[%c0_5, %c0_6] : memref<64x64xbf16, #tpu.memory_space<vmem>>, vector<64x64xbf16>
    %cst = arith.constant dense<0.000000e+00> : vector<64x256xf32>
    %8 = tpu.matmul %7, %5, %cst {dimension_numbers = #tpu.dot_dimension_numbers<[1], [0], [0], [1], [0, 0, 1, 1], [], []>} : vector<64x64xbf16>, vector<64x256xbf16>, vector<64x256xf32> -> vector<64x256xf32>
    %c0_7 = arith.constant 0 : index
    %c0_8 = arith.constant 0 : index
    %9 = vector.load %arg5[%c0_7, %c0_8] : memref<64x1xf32, #tpu.memory_space<vmem>>, vector<64x1xf32>
    %10 = vector.broadcast %9 : vector<64x1xf32> to vector<64x256xf32>
    %11 = arith.addf %8, %10 : vector<64x256xf32>
    %12 = arith.truncf %11 : vector<64x256xf32> to vector<64x256xbf16>
    %c0_9 = arith.constant 0 : index
    %c0_10 = arith.constant 0 : index
    %13 = vector.load %arg9[%c0_9, %c0_10] : memref<16x256xbf16, #tpu.memory_space<vmem>>, vector<16x256xbf16>
    %cst_11 = arith.constant dense<0.000000e+00> : vector<256x256xf32>
    %14 = tpu.matmul %6, %13, %cst_11 {dimension_numbers = #tpu.dot_dimension_numbers<[0], [0], [1], [1], [0, 1, 1, 1], [], []>} : vector<16x256xbf16>, vector<16x256xbf16>, vector<256x256xf32> -> vector<256x256xf32>
    %cst_12 = arith.constant dense<0xFF800000> : vector<256xf32>
    %15 = vector.multi_reduction <maximumf>, %14, %cst_12 [1] : vector<256x256xf32> to vector<256xf32>
    %16 = vector.shape_cast %15 : vector<256xf32> to vector<256x1xf32>
    %17 = vector.broadcast %16 : vector<256x1xf32> to vector<256x256xf32>
    %18 = arith.subf %14, %17 : vector<256x256xf32>
    %19 = math.exp %18 : vector<256x256xf32>
    %cst_13 = arith.constant dense<0.000000e+00> : vector<256xf32>
    %20 = vector.multi_reduction <add>, %19, %cst_13 [1] : vector<256x256xf32> to vector<256xf32>
    %21 = vector.shape_cast %20 : vector<256xf32> to vector<256x1xf32>
    %22 = tpu.reciprocal %21 {approx = true} : vector<256x1xf32> -> vector<256x1xf32>
    %23 = vector.broadcast %22 : vector<256x1xf32> to vector<256x256xf32>
    %24 = arith.mulf %19, %23 : vector<256x256xf32>
    %cst_14 = arith.constant dense<0.000000e+00> : vector<256xf32>
    %25 = vector.multi_reduction <add>, %24, %cst_14 [0] : vector<256x256xf32> to vector<256xf32>
    %26 = vector.shape_cast %25 : vector<256xf32> to vector<1x256xf32>
    %27 = arith.truncf %24 : vector<256x256xf32> to vector<256x256xbf16>
    %c0_15 = arith.constant 0 : index
    %c0_16 = arith.constant 0 : index
    %28 = vector.load %arg10[%c0_15, %c0_16] : memref<1x256xf32, #tpu.memory_space<vmem>>, vector<1x256xf32>
    %29 = arith.addf %28, %26 : vector<1x256xf32>
    %c0_17 = arith.constant 0 : index
    %c0_18 = arith.constant 0 : index
    %30 = vector.load %arg10[%c0_17, %c0_18] : memref<1x256xf32, #tpu.memory_space<vmem>>, vector<1x256xf32>
    tpu.vector_store %arg10[%c0_17, %c0_18], %29 {strides = array<i32>} : memref<1x256xf32, #tpu.memory_space<vmem>>, vector<1x256xf32>,
    %c0_19 = arith.constant 0 : index
    %c0_20 = arith.constant 0 : index
    %c0_21 = arith.constant 0 : index
    %31 = vector.load %arg8[%c0_19, %c0_20, %c0_21] : memref<1x64x256xf32, #tpu.memory_space<vmem>>, vector<1x64x256xf32>
    %32 = vector.shape_cast %31 : vector<1x64x256xf32> to vector<64x256xf32>
    %cst_22 = arith.constant dense<0.000000e+00> : vector<64x256xf32>
    %33 = tpu.matmul %12, %27, %cst_22 {dimension_numbers = #tpu.dot_dimension_numbers<[1], [0], [0], [1], [0, 0, 1, 1], [], []>} : vector<64x256xbf16>, vector<256x256xbf16>, vector<64x256xf32> -> vector<64x256xf32>
    %34 = arith.addf %32, %33 : vector<64x256xf32>
    %c0_23 = arith.constant 0 : index
    %c0_24 = arith.constant 0 : index
    %c0_25 = arith.constant 0 : index
    %35 = vector.load %arg8[%c0_23, %c0_24, %c0_25] : memref<1x64x256xf32, #tpu.memory_space<vmem>>, vector<1x64x256xf32>
    %36 = vector.shape_cast %35 : vector<1x64x256xf32> to vector<64x256xf32>
    %37 = vector.shape_cast %34 : vector<64x256xf32> to vector<1x64x256xf32>
    tpu.vector_store %arg8[%c0_23, %c0_24, %c0_25], %37 {strides = array<i32>} : memref<1x64x256xf32, #tpu.memory_space<vmem>>, vector<1x64x256xf32>,
    %c0_i32_26 = arith.constant 0 : i32
    %38 = arith.cmpi eq, %arg1, %c0_i32_26 : i32
    %39 = arith.extui %38 : i1 to i32
    %c0_i32_27 = arith.constant 0 : i32
    %40 = arith.cmpi ne, %39, %c0_i32_27 : i32
    scf.if %40 {
      %c0_28 = arith.constant 0 : index
      %c0_29 = arith.constant 0 : index
      %c0_30 = arith.constant 0 : index
      %41 = vector.load %arg8[%c0_28, %c0_29, %c0_30] : memref<1x64x256xf32, #tpu.memory_space<vmem>>, vector<1x64x256xf32>
      %42 = vector.shape_cast %41 : vector<1x64x256xf32> to vector<64x256xf32>
      %c0_31 = arith.constant 0 : index
      %c0_32 = arith.constant 0 : index
      %43 = vector.load %arg10[%c0_31, %c0_32] : memref<1x256xf32, #tpu.memory_space<vmem>>, vector<1x256xf32>
      %cst_33 = arith.constant 9.99999971E-10 : f32
      %44 = vector.broadcast %cst_33 : f32 to vector<1x256xf32>
      %45 = arith.addf %44, %43 : vector<1x256xf32>
      %46 = vector.broadcast %45 : vector<1x256xf32> to vector<64x256xf32>
      %47 = arith.divf %42, %46 : vector<64x256xf32>
      %c0_34 = arith.constant 0 : index
      %c0_35 = arith.constant 0 : index
      %c0_36 = arith.constant 0 : index
      %48 = vector.load %arg2[%c0_34, %c0_35, %c0_36] : memref<1x64x256xf32, #tpu.memory_space<vmem>>, vector<1x64x256xf32>
      %49 = vector.shape_cast %48 : vector<1x64x256xf32> to vector<64x256xf32>
      %50 = arith.subf %49, %47 : vector<64x256xf32>
      %51 = arith.truncf %50 : vector<64x256xf32> to vector<64x256xbf16>
      %c0_37 = arith.constant 0 : index
      %c0_38 = arith.constant 0 : index
      %52 = vector.load %arg6[%c0_37, %c0_38] : memref<64x64xbf16, #tpu.memory_space<vmem>>, vector<64x64xbf16>
      %cst_39 = arith.constant dense<0.000000e+00> : vector<64x256xf32>
      %53 = tpu.matmul %52, %51, %cst_39 {dimension_numbers = #tpu.dot_dimension_numbers<[1], [0], [0], [1], [0, 0, 1, 1], [], []>} : vector<64x64xbf16>, vector<64x256xbf16>, vector<64x256xf32> -> vector<64x256xf32>
      %c0_40 = arith.constant 0 : index
      %c0_41 = arith.constant 0 : index
      %54 = vector.load %arg7[%c0_40, %c0_41] : memref<64x1xf32, #tpu.memory_space<vmem>>, vector<64x1xf32>
      %55 = vector.broadcast %54 : vector<64x1xf32> to vector<64x256xf32>
      %56 = arith.addf %53, %55 : vector<64x256xf32>
      %c0_42 = arith.constant 0 : index
      %c0_43 = arith.constant 0 : index
      %c0_44 = arith.constant 0 : index
      %57 = vector.load %arg2[%c0_42, %c0_43, %c0_44] : memref<1x64x256xf32, #tpu.memory_space<vmem>>, vector<1x64x256xf32>
      %58 = vector.shape_cast %57 : vector<1x64x256xf32> to vector<64x256xf32>
      %cst_45 = arith.constant 0.000000e+00 : f32
      %59 = vector.broadcast %cst_45 : f32 to vector<64x256xf32>
      %60 = arith.maximumf %56, %59 : vector<64x256xf32>
      %61 = arith.addf %58, %60 : vector<64x256xf32>
      %c0_46 = arith.constant 0 : index
      %c0_47 = arith.constant 0 : index
      %c0_48 = arith.constant 0 : index
      %62 = vector.load %arg8[%c0_46, %c0_47, %c0_48] : memref<1x64x256xf32, #tpu.memory_space<vmem>>, vector<1x64x256xf32>
      %63 = vector.shape_cast %62 : vector<1x64x256xf32> to vector<64x256xf32>
      %64 = vector.shape_cast %61 : vector<64x256xf32> to vector<1x64x256xf32>
      tpu.vector_store %arg8[%c0_46, %c0_47, %c0_48], %64 {strides = array<i32>} : memref<1x64x256xf32, #tpu.memory_space<vmem>>, vector<1x64x256xf32>,
    } else {
    }
    return
  }
  func.func @transform_0(%arg0: i32, %arg1: i32) -> (i32, i32, i32) {
    %c0_i32 = arith.constant 0 : i32
    %c0_i32_0 = arith.constant 0 : i32
    %c0_i32_1 = arith.constant 0 : i32
    return %arg0, %c0_i32, %c0_i32_0 : i32, i32, i32
  }
  func.func @transform_1(%arg0: i32, %arg1: i32) -> (i32, i32) {
    %c0_i32 = arith.constant 0 : i32
    %c0_i32_0 = arith.constant 0 : i32
    %c0_i32_1 = arith.constant 0 : i32
    return %c0_i32, %c0_i32_0 : i32, i32
  }
  func.func @transform_2(%arg0: i32, %arg1: i32) -> (i32, i32) {
    %c0_i32 = arith.constant 0 : i32
    %c0_i32_0 = arith.constant 0 : i32
    %c0_i32_1 = arith.constant 0 : i32
    return %c0_i32, %c0_i32_0 : i32, i32
  }
  func.func @transform_3(%arg0: i32, %arg1: i32) -> (i32, i32) {
    %c0_i32 = arith.constant 0 : i32
    %c0_i32_0 = arith.constant 0 : i32
    %c0_i32_1 = arith.constant 0 : i32
    return %c0_i32, %c0_i32_0 : i32, i32
  }
  func.func @transform_4(%arg0: i32, %arg1: i32) -> (i32, i32) {
    %c0_i32 = arith.constant 0 : i32
    %c0_i32_0 = arith.constant 0 : i32
    %c0_i32_1 = arith.constant 0 : i32
    return %c0_i32, %c0_i32_0 : i32, i32
  }
  func.func @transform_5(%arg0: i32, %arg1: i32) -> (i32, i32) {
    %c0_i32 = arith.constant 0 : i32
    %c0_i32_0 = arith.constant 0 : i32
    %c0_i32_1 = arith.constant 0 : i32
    return %c0_i32, %c0_i32_0 : i32, i32
  }
  func.func @transform_6(%arg0: i32, %arg1: i32) -> (i32, i32, i32) {
    %c0_i32 = arith.constant 0 : i32
    %c0_i32_0 = arith.constant 0 : i32
    %c0_i32_1 = arith.constant 0 : i32
    return %arg0, %c0_i32, %c0_i32_0 : i32, i32, i32
  }
}

</mosaic_0001>

<bundles_post_ra>
// kernel: sa_layer_forward.1
= control target key start
LH: loop header
LB: loop body
LE: loop exit
PB: predicated region body
PF: predicated region fallthrough
CT: control target
= control target key end

     0   :  { %11 = vsyncpa [#allocation5], 0  ;;  %s3474_s0 = inlined_call_operand.vmem [shape: f32[2,64,256], index: 0, kind: input, shape index: {}]   ;;  %s3475_s1 = inlined_call_operand.vmem [shape: bf16[16,64], index: 1, kind: input, shape index: {}]   ;;  %s3476_s2 = inlined_call_operand.vmem [shape: bf16[64,64], index: 2, kind: input, shape index: {}]   ;;  %s3477_s3 = inlined_call_operand.vmem [shape: f32[64,1], index: 3, kind: input, shape index: {}]   ;;  %s3478_s4 = inlined_call_operand.vmem [shape: bf16[64,64], index: 4, kind: input, shape index: {}]   ;;  %s3479_s5 = inlined_call_operand.vmem [shape: f32[64,1], index: 5, kind: input, shape index: {}]   ;;  %s3480_s6 = inlined_call_operand.hbm [shape: f32[2,64,256], index: 6, kind: output, shape index: {}]  }
   0x1   :  { %13 = vsyncpa [#allocation5 + $0x1], 0  ;;  %s2418_s21 = smov 0   ;;  %s2420_s22 = smov 0  }
   0x2   :  { %s2422_s23 = smov 0   ;;  %s2424_s24 = smov 0  }
   0x3   :  { %s2426_s25 = smov 0   ;;  %s2428_s26 = smov 0  }
   0x4 LB: > { %s1975_s27 = sadd.s32 4294967295, %s2375_s26   ;;  %s1976_s28 = sadd.s32 4294967294, %s2375_s26   ;;  %s2375_s26 = sphi %s2428_s26, %s19_s26   ;;  %s2371_s25 = sphi %s2426_s25, %s3619_s25   ;;  %s2367_s24 = sphi %s2424_s24, %s3618_s24   ;;  %s2363_s23 = sphi %s2422_s23, %s3617_s23   ;;  %s2359_s22 = sphi %s2420_s22, %s3616_s22   ;;  %s2355_s21 = sphi %s2418_s21, %s3615_s21  }
   0x5   : > { %s31_s29 = sadd.s32 1, %s2371_s25  ;;  %s169_s30 = sadd.s32 1, %s2363_s23 }
   0x6   : > { %p33_p0 = scmp.ge.s32.totalorder %s31_s29, 2  ;;  %p179_p1 = scmp.ne.s32.totalorder %s2363_s23, %s2359_s22 }
   0x7   : > { %p180_p2 = scmp.eq.s32.totalorder %s1975_s27, 1  ;;  %p185_p3 = scmp.ne.s32.totalorder %s2359_s22, %s2355_s21 }
   0x8   : > { %s3621_s29 = smov (%p33_p0, %s31_s29), 0  ;;  %p186_p5 = scmp.eq.s32.totalorder %s1976_s28, 1 }
   0x9   : > { %p2458_p4 = por %p180_p2, %p179_p1  ;;  %s166_s8 = ssub.s32 %s2371_s25, %s3621_s29 }
   0xa   : > { %p1979_p6 = scmp.ge.s32.totalorder %s2375_s26, 1  ;;  %p167_p7 = scmp.eq.s32.totalorder %s166_s8, 0 }
   0xb   : > { %p2465_p8 = por %p186_p5, %p185_p3  ;;  %p227_p9 = scmp.lt.s32.totalorder %s2375_s26, 3 }
   0xc   : > { %s2471_s10 = scalar_select %p167_p7, %s2363_s23, %s169_s30  }
   0xd   : > { %p228_p10 = pnand %p1979_p6, %p227_p9 }
   0xf   : > { %231 = sbr.rel (%p228_p10) target bundleno = 1515 (0x5eb), region = 44 }
  0x14   : > { %p257_p11 = scmp.lt.s32.totalorder %s2367_s24, 1  ;;  %v3481_v0 = vmov 0   ;;  %v2094_v25 = vld [vmem:[%s3475_s1] sm:$0xff]   ;;  %vm298_vm0 = vcmask 523264   ;;  %vm618_vm1 = vcmask 130048   ;;  %s2029_s16 = sshll.u32 %s2367_s24, 11 }
  0x15   : > { %334 = vmatprep.mubr.bf16.mxu0 %v3481_v0  ;;  %527 = vmatprep.mubr.bf16.mxu1 %v3481_v0  ;;  %s3420_s20 = scalar_lea.hbm %s3480_s6, %s2029_s16 }
  0x16   : > { %s258_s11 = scalar_select %p257_p11, %s2367_s24, 1  ;;  %2093 = vset.pattern.permute.xlu1 %v3481_v0 }
  0x18   : > { %s2026_s12 = sshll.u32 %s258_s11, 7 }
  0x19   : > { %s2481_s15 = scalar_lea.vmem %s3474_s0, %s2026_s12  ;;  %s254_s12 = sand.u32 1, %s2359_s22  }
  0x1a   : > { %v280_v1 = vld [vmem:[%s2481_s15 + $0x68] sm:$0xff]  ;;  %v282_v2 = vld [vmem:[%s2481_s15 + $0x78] sm:$0xff]  ;;  %v279_v3 = vld [vmem:[%s2481_s15 + $0x60] sm:$0xff]  ;;  %s1980_s13 = sshll.u32 %s254_s12, 7  ;;  %s3429_s24 = scalar_lea.sflag [#allocation5], %s254_s12 }
  0x1b   : > { %v290_v4 = vpack.c.bf16 %v282_v2, %v280_v1  ;;  %v281_v5 = vld [vmem:[%s2481_s15 + $0x70] sm:$0xff]  ;;  %v276_v6 = vld [vmem:[%s2481_s15 + $0x48] sm:$0xff]  ;;  %v278_v7 = vld [vmem:[%s2481_s15 + $0x58] sm:$0xff]  ;;  %s3387_s14 = scalar_lea.vmem [#allocation4], %s1980_s13 }
  0x1c   : > { %v289_v8 = vpack.c.bf16 %v281_v5, %v279_v3  ;;  %v288_v9 = vpack.c.bf16 %v278_v7, %v276_v6  ;;  %v275_v10 = vld [vmem:[%s2481_s15 + $0x40] sm:$0xff]  ;;  %v277_v11 = vld [vmem:[%s2481_s15 + $0x50] sm:$0xff]  ;;  %v272_v12 = vld [vmem:[%s2481_s15 + $0x28] sm:$0xff]  ;;  %s1905_s17 = sshll.u32 %s3387_s14, 4  ;;  %s3422_s17 = int_to_ptr.vmem [resolvable:$true] %s1905_s17 }
  0x1d   : > { %310 = vmatprep.subr.bf16.mxu0 %v290_v4  ;;  %v274_v13 = vld [vmem:[%s2481_s15 + $0x38] sm:$0xff]  ;;  %503 = vmatprep.subr.bf16.mxu1 %v290_v4  ;;  %v287_v14 = vpack.c.bf16 %v277_v11, %v275_v10  ;;  %v271_v15 = vld [vmem:[%s2481_s15 + $0x20] sm:$0xff]  ;;  %v273_v16 = vld [vmem:[%s2481_s15 + $0x30] sm:$0xff]  ;;  %s2299_s27 = scalar_lea.vmem %s3422_s17, 2048 }
  0x1e   : > { %311 = vmatpush1.bf16.msra.mxu0 %v289_v8  ;;  %504 = vmatpush1.bf16.msra.mxu1 %v289_v8  ;;  %v286_v17 = vpack.c.bf16 %v274_v13, %v272_v12  ;;  %v268_v18 = vld [vmem:[%s2481_s15 + $0x8] sm:$0xff]  ;;  %v270_v19 = vld [vmem:[%s2481_s15 + $0x18] sm:$0xff]  ;;  %v285_v20 = vpack.c.bf16 %v273_v16, %v271_v15  ;;  %v267_v22 = vld [vmem:[%s2481_s15] sm:$0xff]  ;;  %p2300_p12 = scmp.ne.s32.totalorder %s3422_s17, %s2299_s27 }
  0x1f   : > { %312 = vmatprep.subr.bf16.mxu0 %v288_v9  ;;  %505 = vmatprep.subr.bf16.mxu1 %v288_v9  ;;  %v284_v21 = vpack.c.bf16 %v270_v19, %v268_v18  ;;  %v269_v23 = vld [vmem:[%s2481_s15 + $0x10] sm:$0xff] }
  0x20   : > { %v283_v24 = vpack.c.bf16 %v269_v23, %v267_v22  ;;  %p2301_p13 = pnand %p2300_p12, %p2458_p4 }
  0x22   : > { %313 = vmatpush1.bf16.msra.mxu0 %v287_v14  ;;  %506 = vmatpush1.bf16.msra.mxu1 %v287_v14  ;;  %p2302_p0 = pneg %p2301_p13 }
  0x23   : > { %314 = vmatprep.subr.bf16.mxu0 %v286_v17  ;;  %507 = vmatprep.subr.bf16.mxu1 %v286_v17 }
  0x26   : > { %315 = vmatpush1.bf16.msra.mxu0 %v285_v20  ;;  %508 = vmatpush1.bf16.msra.mxu1 %v285_v20 }
  0x27   : > { %316 = vmatprep.subr.bf16.mxu0 %v284_v21  ;;  %509 = vmatprep.subr.bf16.mxu1 %v284_v21 }
  0x2a   : > { %317 = vmatpush1.bf16.msra.mxu0 %v283_v24  ;;  %510 = vmatpush1.bf16.msra.mxu1 %v283_v24 }
  0x2d   : > { %1984 = vmatmul.mubr.msk.bf16.vlgmr.msra.gmra.mxu0 %vm298_vm0, %v2094_v25 }
  0x2e   : > { %699 = vmatprep.mubr.bf16.mxu0 %v3481_v0 }
  0xed   : > { %v336_v26 = vpop.f32.mrf.mxu0 }
  0xef   : > { %v338_v27 = vpop.f32.mrf.mxu0 }
  0xf1   : > { %v340_v28 = vpop.f32.mrf.mxu0 }
  0xf2   : > { %v2030_v29 = vpack.c.bf16 %v340_v28, %v336_v26 }
  0xf3   : > { %v342_v30 = vpop.f32.mrf.mxu0 }
  0xf4   : > { %v2031_v31 = vpack.c.bf16 %v342_v30, %v338_v27  ;;  %586 = vxpose.xlu0.c.b16.start.end [1/1] (short) %v2030_v29, 128 }
  0xf6   : > { %681 = vmatprep.subr.bf16.mxu0 %v2031_v31 }
  0xf7   : > { %682 = vmatpush1.bf16.msra.mxu0 %v2030_v29 }
 0x111   : > { %602 = vxpose.xlu0.c.b16.start.end [1/1] (short) %v2031_v31, 128 }
 0x11a   : > { %2092 = vset.pattern.permute.xlu0 %v3481_v0 }
 0x156   : > { %v594_v32 = vpop.trf.xlu0 }
 0x157   : > { %1997 = vmatmul.mubr.msk.bf16.vlgmr.msra.gmra.mxu0 %vm618_vm1, %v594_v32 }
 0x158   : > { %709 = vmatprep.mubr.bf16.mxu0 %v3481_v0 }
 0x15a   : > { %v595_v33 = vpop.trf.xlu0 }
 0x15e   : > { %v596_v34 = vpop.trf.xlu0 }
 0x15f   : > { %1998 = vmatmul.mubr.msk.bf16.gmra.mxu0 %vm618_vm1, %v595_v33 }
 0x160   : > { %719 = vmatprep.mubr.bf16.mxu0 %v3481_v0 }
 0x162   : > { %v597_v35 = vpop.trf.xlu0 }
 0x166   : > { %v598_v36 = vpop.trf.xlu0 }
 0x167   : > { %1999 = vmatmul.mubr.msk.bf16.gmra.mxu0 %vm618_vm1, %v596_v34 }
 0x168   : > { %729 = vmatprep.mubr.bf16.mxu0 %v3481_v0 }
 0x16a   : > { %v599_v37 = vpop.trf.xlu0 }
 0x16e   : > { %v600_v38 = vpop.trf.xlu0 }
 0x16f   : > { %2000 = vmatmul.mubr.msk.bf16.gmra.mxu0 %vm618_vm1, %v597_v35 }
 0x170   : > { %739 = vmatprep.mubr.bf16.mxu0 %v3481_v0 }
 0x172   : > { %v601_v39 = vpop.trf.xlu0 }
 0x176   : > { %v610_v40 = vpop.trf.xlu0 }
 0x177   : > { %2001 = vmatmul.mubr.msk.bf16.gmra.mxu0 %vm618_vm1, %v598_v36 }
 0x178   : > { %749 = vmatprep.mubr.bf16.mxu0 %v3481_v0 }
 0x17a   : > { %v611_v41 = vpop.trf.xlu0 }
 0x17e   : > { %v612_v42 = vpop.trf.xlu0 }
 0x17f   : > { %2002 = vmatmul.mubr.msk.bf16.gmra.mxu0 %vm618_vm1, %v599_v37 }
 0x180   : > { %759 = vmatprep.mubr.bf16.mxu0 %v3481_v0 }
 0x182   : > { %v613_v43 = vpop.trf.xlu0 }
 0x186   : > { %v614_v44 = vpop.trf.xlu0 }
 0x187   : > { %2003 = vmatmul.mubr.msk.bf16.gmra.mxu0 %vm618_vm1, %v600_v38 }
 0x188   : > { %769 = vmatprep.mubr.bf16.mxu0 %v3481_v0 }
 0x18a   : > { %v615_v45 = vpop.trf.xlu0 }
 0x18e   : > { %v616_v46 = vpop.trf.xlu0 }
 0x18f   : > { %2004 = vmatmul.mubr.msk.bf16.gmra.mxu0 %vm618_vm1, %v601_v39 }
 0x190   : > { %779 = vmatprep.mubr.bf16.mxu0 %v3481_v0 }
 0x192   : > { %v617_v47 = vpop.trf.xlu0 }
 0x197   : > { %2005 = vmatmul.mubr.msk.bf16.gmra.mxu0 %vm618_vm1, %v610_v40 }
 0x198   : > { %789 = vmatprep.mubr.bf16.mxu0 %v3481_v0 }
 0x19f   : > { %2006 = vmatmul.mubr.msk.bf16.gmra.mxu0 %vm618_vm1, %v611_v41 }
 0x1a0   : > { %799 = vmatprep.mubr.bf16.mxu0 %v3481_v0 }
 0x1a7   : > { %2007 = vmatmul.mubr.msk.bf16.gmra.mxu0 %vm618_vm1, %v612_v42 }
 0x1a8   : > { %809 = vmatprep.mubr.bf16.mxu0 %v3481_v0 }
 0x1af   : > { %2008 = vmatmul.mubr.msk.bf16.gmra.mxu0 %vm618_vm1, %v613_v43 }
 0x1b0   : > { %819 = vmatprep.mubr.bf16.mxu0 %v3481_v0 }
 0x1b7   : > { %2009 = vmatmul.mubr.msk.bf16.gmra.mxu0 %vm618_vm1, %v614_v44 }
 0x1b8   : > { %829 = vmatprep.mubr.bf16.mxu0 %v3481_v0 }
 0x1bf   : > { %2010 = vmatmul.mubr.msk.bf16.gmra.mxu0 %vm618_vm1, %v615_v45 }
 0x1c0   : > { %839 = vmatprep.mubr.bf16.mxu0 %v3481_v0 }
 0x1c7   : > { %2011 = vmatmul.mubr.msk.bf16.gmra.mxu0 %vm618_vm1, %v616_v46 }
 0x1c8   : > { %849 = vmatprep.mubr.bf16.mxu0 %v3481_v0 }
 0x1cf   : > { %2012 = vmatmul.mubr.msk.bf16.gmra.mxu0 %vm618_vm1, %v617_v47 }
 0x217   : > { %v2536_v48 = vpop.f32.mrf.mxu0 }
 0x219   : > { %v2538_v49 = vpop.f32.mrf.mxu0 }
 0x21a   : > { %v860_v39 = vmax.f32 %v2536_v48, %v2538_v49 }
 0x21b   : > { %v2540_v50 = vpop.f32.mrf.mxu0 }
 0x21d   : > { %v2542_v51 = vpop.f32.mrf.mxu0 }
 0x21e   : > { %v863_v42 = vmax.f32 %v2540_v50, %v2542_v51 }
 0x21f   : > { %v2544_v52 = vpop.f32.mrf.mxu0 }
 0x221   : > { %v2546_v53 = vpop.f32.mrf.mxu0 }
 0x222   : > { %v866_v33 = vmax.f32 %v2544_v52, %v2546_v53 }
 0x223   : > { %v2548_v54 = vpop.f32.mrf.mxu0 }
 0x225   : > { %v2550_v55 = vpop.f32.mrf.mxu0 }
 0x226   : > { %v869_v36 = vmax.f32 %v2548_v54, %v2550_v55 }
 0x227   : > { %v2552_v56 = vpop.f32.mrf.mxu0 }
 0x229   : > { %v2554_v57 = vpop.f32.mrf.mxu0 }
 0x22a   : > { %v872_v2 = vmax.f32 %v2552_v56, %v2554_v57 }
 0x22b   : > { %v2556_v58 = vpop.f32.mrf.mxu0 }
 0x22d   : > { %v2558_v59 = vpop.f32.mrf.mxu0 }
 0x22e   : > { %v875_v30 = vmax.f32 %v2556_v58, %v2558_v59 }
 0x22f   : > { %v2560_v60 = vpop.f32.mrf.mxu0 }
 0x231   : > { %v2562_v61 = vpop.f32.mrf.mxu0 }
 0x232   : > { %v878_v62 = vmax.f32 %v2560_v60, %v2562_v61 }
 0x233   : > { %v2566_v63 = vpop.f32.mrf.mxu0 }
 0x234   : > { %879 = vmax.xlane.f32.xlu1 %v878_v62 }
 0x235   : > { %v2568_v1 = vpop.f32.mrf.mxu0 }
 0x236   : > { %v881_v3 = vmax.f32 %v2566_v63, %v2568_v1 }
 0x237   : > { %v2574_v4 = vpop.f32.mrf.mxu0 }
 0x238   : > { %873 = vmax.xlane.f32.xlu1 %v872_v2  ;;  %882 = vmax.xlane.f32.xlu0 %v881_v3 }
 0x239   : > { %v2576_v5 = vpop.f32.mrf.mxu0 }
 0x23a   : > { %v884_v6 = vmax.f32 %v2574_v4, %v2576_v5 }
 0x23b   : > { %v2580_v7 = vpop.f32.mrf.mxu0 }
 0x23c   : > { %885 = vmax.xlane.f32.xlu1 %v884_v6 }
 0x23d   : > { %v2582_v8 = vpop.f32.mrf.mxu0 }
 0x23e   : > { %v887_v9 = vmax.f32 %v2580_v7, %v2582_v8 }
 0x23f   : > { %v2586_v10 = vpop.f32.mrf.mxu0 }
 0x240   : > { %888 = vmax.xlane.f32.xlu1 %v887_v9 }
 0x241   : > { %v2588_v11 = vpop.f32.mrf.mxu0 }
 0x242   : > { %v890_v12 = vmax.f32 %v2586_v10, %v2588_v11 }
 0x243   : > { %v2592_v13 = vpop.f32.mrf.mxu0 }
 0x244   : > { %891 = vmax.xlane.f32.xlu1 %v890_v12 }
 0x245   : > { %v2594_v14 = vpop.f32.mrf.mxu0 }
 0x246   : > { %v893_v15 = vmax.f32 %v2592_v13, %v2594_v14 }
 0x247   : > { %v2598_v16 = vpop.f32.mrf.mxu0 }
 0x248   : > { %894 = vmax.xlane.f32.xlu1 %v893_v15 }
 0x249   : > { %v2600_v17 = vpop.f32.mrf.mxu0 }
 0x24a   : > { %v896_v18 = vmax.f32 %v2598_v16, %v2600_v17 }
 0x24b   : > { %v2604_v19 = vpop.f32.mrf.mxu0 }
 0x24c   : > { %897 = vmax.xlane.f32.xlu1 %v896_v18 }
 0x24d   : > { %v2606_v20 = vpop.f32.mrf.mxu0 }
 0x24e   : > { %v899_v21 = vmax.f32 %v2604_v19, %v2606_v20 }
 0x24f   : > { %v2610_v22 = vpop.f32.mrf.mxu0 }
 0x250   : > { %900 = vmax.xlane.f32.xlu1 %v899_v21 }
 0x251   : > { %v2612_v23 = vpop.f32.mrf.mxu0 }
 0x252   : > { %v902_v24 = vmax.f32 %v2610_v22, %v2612_v23 }
 0x253   : > { %v2616_v25 = vpop.f32.mrf.mxu0 }
 0x254   : > { %903 = vmax.xlane.f32.xlu1 %v902_v24 }
 0x255   : > { %v2618_v26 = vpop.f32.mrf.mxu0 }
 0x256   : > { %v905_v27 = vmax.f32 %v2616_v25, %v2618_v26 }
 0x257   : > { %v2622_v28 = vpop.f32.mrf.mxu0 }
 0x258   : > { %3528 = vst [vmem:[#allocation7_spill] sm:$0xff] %v2622_v28  ;;  %906 = vmax.xlane.f32.xlu1 %v905_v27 }
 0x259   : > { %v2624_v29 = vpop.f32.mrf.mxu0 }
 0x25a   : > { %3529 = vst [vmem:[#allocation8_spill] sm:$0xff] %v2624_v29 }
 0x25b   : > { %v2628_v31 = vpop.f32.mrf.mxu0 }
 0x25c   : > { %3530 = vst [vmem:[#allocation9_spill] sm:$0xff] %v2628_v31  ;;  %876 = vmax.xlane.f32.xlu1 %v875_v30 }
 0x25d   : > { %v2630_v32 = vpop.f32.mrf.mxu0 }
 0x25e   : > { %3531 = vst [vmem:[#allocation10_spill] sm:$0xff] %v2630_v32 }
 0x25f   : > { %v2634_v34 = vpop.f32.mrf.mxu0 }
 0x260   : > { %3532 = vst [vmem:[#allocation11_spill] sm:$0xff] %v2634_v34  ;;  %867 = vmax.xlane.f32.xlu1 %v866_v33 }
 0x261   : > { %v2636_v35 = vpop.f32.mrf.mxu0 }
 0x262   : > { %3533 = vst [vmem:[#allocation12_spill] sm:$0xff] %v2636_v35 }
 0x263   : > { %v2640_v37 = vpop.f32.mrf.mxu0 }
 0x264   : > { %3534 = vst [vmem:[#allocation13_spill] sm:$0xff] %v2640_v37  ;;  %870 = vmax.xlane.f32.xlu1 %v869_v36 }
 0x265   : > { %v2642_v38 = vpop.f32.mrf.mxu0 }
 0x266   : > { %3535 = vst [vmem:[#allocation14_spill] sm:$0xff] %v2642_v38 }
 0x267   : > { %v2646_v40 = vpop.f32.mrf.mxu0 }
 0x268   : > { %861 = vmax.xlane.f32.xlu1 %v860_v39 }
 0x269   : > { %v2648_v41 = vpop.f32.mrf.mxu0 }
 0x26a   : > { %v920_v0 = vmax.f32 %v2646_v40, %v2648_v41 }
 0x26b   : > { %v2652_v43 = vpop.f32.mrf.mxu0 }
 0x26c   : > { %3536 = vst [vmem:[#allocation15_spill] sm:$0xff] %v2652_v43  ;;  %864 = vmax.xlane.f32.xlu1 %v863_v42 }
 0x26d   : > { %v2654_v44 = vpop.f32.mrf.mxu0 }
 0x26e   : > { %3537 = vst [vmem:[#allocation16_spill] sm:$0xff] %v2654_v44 }
 0x26f   : > { %v2656_v45 = vpop.f32.mrf.mxu0 }
 0x270   : > { %3538 = vst [vmem:[#allocation17_spill] sm:$0xff] %v2656_v45 }
 0x271   : > { %v2658_v46 = vpop.f32.mrf.mxu0 }
 0x272   : > { %3539 = vst [vmem:[#allocation18_spill] sm:$0xff] %v2658_v46  ;;  %v926_v36 = vmax.f32 %v2656_v45, %v2658_v46  ;;  %v914_v46 = vmax.f32 %v2634_v34, %v2636_v35 }
 0x273   : > { %v2660_v47 = vpop.f32.mrf.mxu0 }
 0x274   : > { %3540 = vst [vmem:[#allocation19_spill] sm:$0xff] %v2660_v47 }
 0x275   : > { %v2662_v62 = vpop.f32.mrf.mxu0 }
 0x276   : > { %3541 = vst [vmem:[#allocation20_spill] sm:$0xff] %v2662_v62 }
 0x277   : > { %v2664_v2 = vpop.f32.mrf.mxu0 }
 0x278   : > { %3542 = vst [vmem:[#allocation21_spill] sm:$0xff] %v2664_v2 }
 0x279   : > { %v2666_v3 = vpop.f32.mrf.mxu0 }
 0x27a   : > { %3543 = vst [vmem:[#allocation22_spill] sm:$0xff] %v2666_v3  ;;  %v932_v27 = vmax.f32 %v2664_v2, %v2666_v3 }
 0x27b   : > { %v2668_v6 = vpop.f32.mrf.mxu0 }
 0x27c   : > { %3544 = vst [vmem:[#allocation23_spill] sm:$0xff] %v2668_v6 }
 0x27d   : > { %v2670_v9 = vpop.f32.mrf.mxu0 }
 0x27e   : > { %3545 = vst [vmem:[#allocation24_spill] sm:$0xff] %v2670_v9 }
 0x27f   : > { %v2672_v12 = vpop.f32.mrf.mxu0 }
 0x281   : > { %v2674_v15 = vpop.f32.mrf.mxu0 }
 0x282   : > { %v938_v18 = vmax.f32 %v2672_v12, %v2674_v15 }
 0x283   : > { %v2678_v21 = vpop.f32.mrf.mxu0 }
 0x284   : > { %939 = vmax.xlane.f32.xlu0 %v938_v18 }
 0x285   : > { %v2680_v24 = vpop.f32.mrf.mxu0 }
 0x286   : > { %v941_v34 = vmax.f32 %v2678_v21, %v2680_v24 }
 0x287   : > { %v2684_v30 = vpop.f32.mrf.mxu0 }
 0x288   : > { %933 = vmax.xlane.f32.xlu0 %v932_v27 }
 0x289   : > { %v2686_v33 = vpop.f32.mrf.mxu0 }
 0x28a   : > { %v944_v39 = vmax.f32 %v2684_v30, %v2686_v33 }
 0x28b   : > { %v2692_v42 = vpop.f32.mrf.mxu0 }
 0x28c   : > { %927 = vmax.xlane.f32.xlu0 %v926_v36  ;;  %945 = vmax.xlane.f32.xlu1 %v944_v39 }
 0x28d   : > { %v2694_v18 = vpop.f32.mrf.mxu0 }
 0x28e   : > { %v947_v35 = vmax.f32 %v2692_v42, %v2694_v18 }
 0x28f   : > { %v2698_v3 = vpop.f32.mrf.mxu0 }
 0x290   : > { %921 = vmax.xlane.f32.xlu0 %v920_v0  ;;  %v908_v0 = vmax.f32 %v2622_v28, %v2624_v29  ;;  %v3546_v29 = vmov 0  }
 0x291   : > { %v2700_v27 = vpop.f32.mrf.mxu0 }
 0x292   : > { %v950_v45 = vmax.f32 %v2698_v3, %v2700_v27 }
 0x293   : > { %v2706_v2 = vpop.f32.mrf.mxu0 }
 0x294   : > { %915 = vmax.xlane.f32.xlu0 %v914_v46  ;;  %951 = vmax.xlane.f32.xlu1 %v950_v45  ;;  %v2095_v45 = vld [vmem:[%s3476_s2] sm:$0xff]   ;;  %v935_v46 = vmax.f32 %v2668_v6, %v2670_v9 }
 0x295   : > { %v2708_v36 = vpop.f32.mrf.mxu0  ;;  %1991 = vmatmul.mubr.msk.bf16.vlgmr.msra.gmra.mxu1 %vm298_vm0, %v2095_v45  ;;  %v2097_v45 = vld [vmem:[%s3476_s2 + $0x10] sm:$0xff]  }
 0x296   : > { %v953_v39 = vmax.f32 %v2706_v2, %v2708_v36  ;;  %537 = vmatprep.mubr.bf16.mxu1 %v3546_v29 }
 0x298   : > { %909 = vmax.xlane.f32.xlu0 %v908_v0  ;;  %954 = vmax.xlane.f32.xlu1 %v953_v39  ;;  %v929_v39 = vmax.f32 %v2660_v47, %v2662_v62  ;;  %v917_v0 = vmax.f32 %v2640_v37, %v2642_v38 }
 0x29c   : > { %948 = vmax.xlane.f32.xlu1 %v947_v35  ;;  %v2096_v35 = vld [vmem:[%s3476_s2 + $0x8] sm:$0xff]  }
 0x29d   : > { %1992 = vmatmul.mubr.msk.bf16.gmra.mxu1 %vm298_vm0, %v2096_v35 }
 0x29e   : > { %547 = vmatprep.mubr.bf16.mxu1 %v3546_v29 }
 0x2a0   : > { %942 = vmax.xlane.f32.xlu1 %v941_v34  ;;  %v923_v34 = vmax.f32 %v2652_v43, %v2654_v44 }
 0x2a4   : > { %936 = vmax.xlane.f32.xlu1 %v935_v46  ;;  %v911_v46 = vmax.f32 %v2628_v31, %v2630_v32 }
 0x2a5   : > { %1993 = vmatmul.mubr.msk.bf16.gmra.mxu1 %vm298_vm0, %v2097_v45 }
 0x2a6   : > { %557 = vmatprep.mubr.bf16.mxu1 %v3546_v29 }
 0x2a8   : > { %930 = vmax.xlane.f32.xlu1 %v929_v39  ;;  %v2098_v39 = vld [vmem:[%s3476_s2 + $0x18] sm:$0xff]  }
 0x2ac   : > { %924 = vmax.xlane.f32.xlu1 %v923_v34 }
 0x2ad   : > { %1994 = vmatmul.mubr.msk.bf16.gmra.mxu1 %vm298_vm0, %v2098_v39 }
 0x2b0   : > { %918 = vmax.xlane.f32.xlu1 %v917_v0 }
 0x2b4   : > { %912 = vmax.xlane.f32.xlu1 %v911_v46 }
 0x2bd   : > { %v2747_v35 = vpop.xlane.xlu1 %879 }
 0x2c1   : > { %v2749_v34 = vpop.xlane.xlu1 %873 }
 0x2c5   : > { %v886_v38 = vpop.xlane.xlu1 %885 }
 0x2c9   : > { %v889_v0 = vpop.xlane.xlu1 %888 }
 0x2ca   : > { %v974_v45 = vsub.f32 %v2580_v7, %v889_v0  ;;  %v975_v32 = vsub.f32 %v2582_v8, %v889_v0 }
 0x2cc   : > { %v1056_v29 = vmul.f32 1.442695, %v974_v45  ;;  %v1058_v28 = vmul.f32 1.442695, %v975_v32  ;;  %v972_v32 = vsub.f32 %v2574_v4, %v886_v38 }
 0x2cd   : > { %v892_v37 = vpop.xlane.xlu1 %891 }
 0x2ce   : > { %2103 = vpow2.f32 %v1056_v29  ;;  %v976_v0 = vsub.f32 %v2586_v10, %v892_v37  ;;  %v1052_v4 = vmul.f32 1.442695, %v972_v32 }
 0x2d1   : > { %v895_v44 = vpop.xlane.xlu1 %894 }
 0x2d2   : > { %v978_v39 = vsub.f32 %v2592_v13, %v895_v44  ;;  %v979_v9 = vsub.f32 %v2594_v14, %v895_v44  ;;  %v977_v13 = vsub.f32 %v2588_v11, %v892_v37  ;;  %v883_v11 = vpop.xlane.xlu0 %882 }
 0x2d4   : > { %v1062_v37 = vmul.f32 1.442695, %v977_v13 }
 0x2d5   : > { %v898_v46 = vpop.xlane.xlu1 %897 }
 0x2d6   : > { %v980_v31 = vsub.f32 %v2598_v16, %v898_v46  ;;  %v981_v43 = vsub.f32 %v2600_v17, %v898_v46  ;;  %v1064_v16 = vmul.f32 1.442695, %v978_v39 }
 0x2d8   : > { %v1068_v62 = vmul.f32 1.442695, %v980_v31  ;;  %v1070_v47 = vmul.f32 1.442695, %v981_v43  ;;  %v1066_v31 = vmul.f32 1.442695, %v979_v9 }
 0x2d9   : > { %v901_v6 = vpop.xlane.xlu1 %900  ;;  %v1060_v43 = vmul.f32 1.442695, %v976_v0 }
 0x2da   : > { %2105 = vpow2.f32 %v1068_v62  ;;  %v982_v7 = vsub.f32 %v2604_v19, %v901_v6  ;;  %v983_v8 = vsub.f32 %v2606_v20, %v901_v6  ;;  %v973_v20 = vsub.f32 %v2576_v5, %v886_v38 }
 0x2db   : > { %2107 = vpow2.f32 %v1070_v47  ;;  %v969_v5 = vsub.f32 %v2562_v61, %v2747_v35  ;;  %v970_v62 = vsub.f32 %v2566_v63, %v883_v11  ;;  %v2773_v39 = vpop.eup %2103  ;;  %v965_v63 = vsub.f32 %v2554_v57, %v2749_v34 }
 0x2dc   : > { %v1072_v45 = vmul.f32 1.442695, %v982_v7  ;;  %v1074_v17 = vmul.f32 1.442695, %v983_v8  ;;  %2109 = vpow2.f32 %v1058_v28  ;;  %v968_v28 = vsub.f32 %v2560_v60, %v2747_v35 }
 0x2dd   : > { %v904_v29 = vpop.xlane.xlu1 %903  ;;  %v1054_v38 = vmul.f32 1.442695, %v973_v20  ;;  %v971_v60 = vsub.f32 %v2568_v1, %v883_v11  ;;  %v1046_v61 = vmul.f32 1.442695, %v969_v5  ;;  %v1048_v1 = vmul.f32 1.442695, %v970_v62 }
 0x2de   : > { %2111 = vpow2.f32 %v1072_v45  ;;  %v984_v14 = vsub.f32 %v2610_v22, %v904_v29  ;;  %v985_v19 = vsub.f32 %v2612_v23, %v904_v29  ;;  %v1044_v7 = vmul.f32 1.442695, %v968_v28 }
 0x2df   : > { %2113 = vpow2.f32 %v1074_v17  ;;  %v1050_v0 = vmul.f32 1.442695, %v971_v60 }
 0x2e0   : > { %2115 = vpow2.f32 %v1064_v16  ;;  %v1076_v10 = vmul.f32 1.442695, %v984_v14  ;;  %v1078_v44 = vmul.f32 1.442695, %v985_v19 }
 0x2e1   : > { %2117 = vpow2.f32 %v1066_v31  ;;  %v907_v47 = vpop.xlane.xlu1 %906  ;;  %v1038_v31 = vmul.f32 1.442695, %v965_v63 }
 0x2e2   : > { %2119 = vpow2.f32 %v1076_v10  ;;  %v986_v22 = vsub.f32 %v2616_v25, %v907_v47  ;;  %v987_v23 = vsub.f32 %v2618_v26, %v907_v47  ;;  %v964_v25 = vsub.f32 %v2552_v56, %v2749_v34 }
 0x2e3   : > { %2121 = vpow2.f32 %v1078_v44 }
 0x2e4   : > { %2123 = vpow2.f32 %v1060_v43  ;;  %v1080_v6 = vmul.f32 1.442695, %v986_v22  ;;  %v1082_v9 = vmul.f32 1.442695, %v987_v23  ;;  %v1036_v13 = vmul.f32 1.442695, %v964_v25 }
 0x2e5   : > { %2125 = vpow2.f32 %v1062_v37  ;;  %v877_v46 = vpop.xlane.xlu1 %876 }
 0x2e6   : > { %2127 = vpow2.f32 %v1052_v4  ;;  %v966_v8 = vsub.f32 %v2556_v58, %v877_v46  ;;  %v967_v16 = vsub.f32 %v2558_v59, %v877_v46 }
 0x2e7   : > { %v2777_v26 = vpop.eup %2105  ;;  %2129 = vpow2.f32 %v1054_v38 }
 0x2e8   : > { %v2781_v35 = vpop.eup %2107  ;;  %2131 = vpow2.f32 %v1080_v6  ;;  %v1040_v59 = vmul.f32 1.442695, %v966_v8  ;;  %v1042_v14 = vmul.f32 1.442695, %v967_v16 }
 0x2e9   : > { %2133 = vpow2.f32 %v1082_v9  ;;  %v868_v45 = vpop.xlane.xlu1 %867  ;;  %v1184_v56 = vadd.f32 %v2781_v35, %v2777_v26  ;;  %v2787_v17 = vpop.eup %2109 }
 0x2ea   : > { %2135 = vpow2.f32 %v1044_v7  ;;  %v960_v57 = vsub.f32 %v2544_v52, %v868_v45  ;;  %v961_v58 = vsub.f32 %v2546_v53, %v868_v45 }
 0x2eb   : > { %v2790_v34 = vpop.eup %2111  ;;  %2137 = vpow2.f32 %v1046_v61  ;;  %1185 = vadd.xlane.f32.xlu0 %v1184_v56 }
 0x2ec   : > { %v2793_v29 = vpop.eup %2113  ;;  %2139 = vpow2.f32 %v1048_v1  ;;  %v1028_v43 = vmul.f32 1.442695, %v960_v57  ;;  %v1030_v28 = vmul.f32 1.442695, %v961_v58 }
 0x2ed   : > { %v2795_v32 = vpop.eup %2115  ;;  %2141 = vpow2.f32 %v1050_v0  ;;  %v871_v19 = vpop.xlane.xlu1 %870  ;;  %v1187_v20 = vadd.f32 %v2793_v29, %v2790_v34 }
 0x2ee   : > { %v2799_v52 = vpop.eup %2117  ;;  %2143 = vpow2.f32 %v1036_v13  ;;  %v962_v10 = vsub.f32 %v2548_v54, %v871_v19  ;;  %v963_v53 = vsub.f32 %v2550_v55, %v871_v19 }
 0x2ef   : > { %v2803_v44 = vpop.eup %2119  ;;  %2145 = vpow2.f32 %v1038_v31  ;;  %1188 = vadd.xlane.f32.xlu1 %v1187_v20  ;;  %v1181_v54 = vadd.f32 %v2799_v52, %v2795_v32 }
 0x2f0   : > { %v2805_v11 = vpop.eup %2121  ;;  %2147 = vpow2.f32 %v1040_v59  ;;  %v1032_v37 = vmul.f32 1.442695, %v962_v10  ;;  %v1034_v4 = vmul.f32 1.442695, %v963_v53 }
 0x2f1   : > { %v2807_v47 = vpop.eup %2123  ;;  %2149 = vpow2.f32 %v1042_v14  ;;  %v862_v22 = vpop.xlane.xlu1 %861  ;;  %v1190_v23 = vadd.f32 %v2805_v11, %v2803_v44 }
 0x2f2   : > { %v2813_v55 = vpop.eup %2125  ;;  %2151 = vpow2.f32 %v1028_v43  ;;  %v956_v5 = vsub.f32 %v2536_v48, %v862_v22  ;;  %v957_v38 = vsub.f32 %v2538_v49, %v862_v22  ;;  %v1175_v48 = vadd.f32 %v2787_v17, %v2773_v39 }
 0x2f3   : > { %v2817_v62 = vpop.eup %2127  ;;  %2153 = vpow2.f32 %v1030_v28  ;;  %1191 = vadd.xlane.f32.xlu0 %v1190_v23  ;;  %1182 = vadd.xlane.f32.xlu1 %v1181_v54  ;;  %v1178_v25 = vadd.f32 %v2813_v55, %v2807_v47 }
 0x2f4   : > { %v2819_v6 = vpop.eup %2129  ;;  %2155 = vpow2.f32 %v1032_v37  ;;  %v1020_v60 = vmul.f32 1.442695, %v956_v5  ;;  %v1022_v46 = vmul.f32 1.442695, %v957_v38 }
 0x2f5   : > { %v2821_v9 = vpop.eup %2131  ;;  %2157 = vpow2.f32 %v1034_v4  ;;  %v865_v7 = vpop.xlane.xlu1 %864  ;;  %v1172_v56 = vadd.f32 %v2819_v6, %v2817_v62 }
 0x2f6   : > { %v2827_v49 = vpop.eup %2133  ;;  %v958_v61 = vsub.f32 %v2540_v50, %v865_v7  ;;  %v959_v63 = vsub.f32 %v2542_v51, %v865_v7  ;;  %2159 = vpow2.f32 %v1020_v60 }
 0x2f7   : > { %v2831_v1 = vpop.eup %2135  ;;  %1179 = vadd.xlane.f32.xlu0 %v1178_v25  ;;  %1176 = vadd.xlane.f32.xlu1 %v1175_v48  ;;  %2161 = vpow2.f32 %v1022_v46  ;;  %v1193_v50 = vadd.f32 %v2827_v49, %v2821_v9 }
 0x2f8   : > { %v2833_v8 = vpop.eup %2137  ;;  %v1024_v0 = vmul.f32 1.442695, %v958_v61  ;;  %v1026_v16 = vmul.f32 1.442695, %v959_v63 }
 0x2f9   : > { %v2835_v45 = vpop.eup %2139  ;;  %v1166_v58 = vadd.f32 %v2833_v8, %v2831_v1 }
 0x2fa   : > { %v2841_v13 = vpop.eup %2141  ;;  %2163 = vpow2.f32 %v1024_v0 }
 0x2fb   : > { %v2843_v51 = vpop.eup %2143  ;;  %2165 = vpow2.f32 %v1026_v16  ;;  %1173 = vadd.xlane.f32.xlu0 %v1172_v56  ;;  %1194 = vadd.xlane.f32.xlu1 %v1193_v50  ;;  %v1169_v59 = vadd.f32 %v2841_v13, %v2835_v45 }
 0x2fc   : > { %v2845_v57 = vpop.eup %2145 }
 0x2fd   : > { %v2847_v31 = vpop.eup %2147  ;;  %v1160_v10 = vadd.f32 %v2845_v57, %v2843_v51 }
 0x2fe   : > { %v2853_v14 = vpop.eup %2149 }
 0x2ff   : > { %v2855_v19 = vpop.eup %2151  ;;  %1167 = vadd.xlane.f32.xlu0 %v1166_v58  ;;  %1170 = vadd.xlane.f32.xlu1 %v1169_v59  ;;  %v1163_v53 = vadd.f32 %v2853_v14, %v2847_v31 }
 0x300   : > { %v2857_v20 = vpop.eup %2153 }
 0x301   : > { %v2859_v43 = vpop.eup %2155  ;;  %v1154_v4 = vadd.f32 %v2857_v20, %v2855_v19 }
 0x302   : > { %3547 = vst [vmem:[#allocation25_spill] sm:$0xff] %v2859_v43  ;;  %v2865_v28 = vpop.eup %2157 }
 0x303   : > { %1161 = vadd.xlane.f32.xlu0 %v1160_v10  ;;  %1164 = vadd.xlane.f32.xlu1 %v1163_v53  ;;  %v2867_v37 = vpop.eup %2159  ;;  %v1157_v22 = vadd.f32 %v2865_v28, %v2859_v43  ;;  %v3548_v53 = vld [vmem:[#allocation21_spill] sm:$0xff] }
 0x304   : > { %v2873_v23 = vpop.eup %2161 }
 0x305   : > { %v1148_v38 = vadd.f32 %v2873_v23, %v2867_v37 }
 0x307   : > { %v2875_v54 = vpop.eup %2163  ;;  %1155 = vadd.xlane.f32.xlu0 %v1154_v4  ;;  %1158 = vadd.xlane.f32.xlu1 %v1157_v22  ;;  %v3549_v22 = vld [vmem:[#allocation22_spill] sm:$0xff] }
 0x308   : > { %v2877_v5 = vpop.eup %2165 }
 0x309   : > { %v1151_v60 = vadd.f32 %v2877_v5, %v2875_v54 }
 0x30b   : > { %1149 = vadd.xlane.f32.xlu0 %v1148_v38  ;;  %1152 = vadd.xlane.f32.xlu1 %v1151_v60  ;;  %v3550_v60 = vld [vmem:[#allocation17_spill] sm:$0xff] }
 0x30d   : > { %v940_v46 = vpop.xlane.xlu0 %939 }
 0x30e   : > { %v1008_v16 = vsub.f32 %v2672_v12, %v940_v46  ;;  %v1009_v58 = vsub.f32 %v2674_v15, %v940_v46  ;;  %v3551_v15 = vld [vmem:[#allocation18_spill] sm:$0xff] }
 0x310   : > { %v1124_v10 = vmul.f32 1.442695, %v1008_v16 }
 0x311   : > { %v934_v48 = vpop.xlane.xlu0 %933 }
 0x312   : > { %v1004_v4 = vsub.f32 %v3548_v53, %v934_v48  ;;  %v1005_v38 = vsub.f32 %v3549_v22, %v934_v48 }
 0x314   : > { %v1118_v43 = vmul.f32 1.442695, %v1005_v38 }
 0x315   : > { %v946_v7 = vpop.xlane.xlu1 %945  ;;  %v928_v56 = vpop.xlane.xlu0 %927 }
 0x316   : > { %v1012_v25 = vsub.f32 %v2684_v30, %v946_v7  ;;  %v1013_v61 = vsub.f32 %v2686_v33, %v946_v7  ;;  %v1000_v7 = vsub.f32 %v3550_v60, %v928_v56 }
 0x318   : > { %v1132_v63 = vmul.f32 1.442695, %v1012_v25  ;;  %v1134_v0 = vmul.f32 1.442695, %v1013_v61  ;;  %v1126_v61 = vmul.f32 1.442695, %v1009_v58 }
 0x319   : > { %v1108_v46 = vmul.f32 1.442695, %v1000_v7  ;;  %v3552_v7 = vld [vmem:[#allocation11_spill] sm:$0xff] }
 0x31a   : > { %2167 = vpow2.f32 %v1132_v63  ;;  %v1116_v63 = vmul.f32 1.442695, %v1004_v4 }
 0x31b   : > { %2169 = vpow2.f32 %v1134_v0  ;;  %v922_v0 = vpop.xlane.xlu0 %921 }
 0x31c   : > { %2171 = vpow2.f32 %v1124_v10 }
 0x31d   : > { %v952_v50 = vpop.xlane.xlu1 %951 }
 0x31e   : > { %v1016_v59 = vsub.f32 %v2698_v3, %v952_v50  ;;  %v1017_v30 = vsub.f32 %v2700_v27, %v952_v50  ;;  %v1001_v3 = vsub.f32 %v3551_v15, %v928_v56  ;;  %v996_v50 = vsub.f32 %v2646_v40, %v922_v0 }
 0x31f   : > { %v997_v56 = vsub.f32 %v2648_v41, %v922_v0  ;;  %v916_v4 = vpop.xlane.xlu0 %915  ;;  %v3554_v0 = vld [vmem:[#allocation24_spill] sm:$0xff] }
 0x320   : > { %v1140_v33 = vmul.f32 1.442695, %v1016_v59  ;;  %v1142_v25 = vmul.f32 1.442695, %v1017_v30  ;;  %v1110_v53 = vmul.f32 1.442695, %v1001_v3 }
 0x321   : > { %v955_v12 = vpop.xlane.xlu1 %954  ;;  %v1102_v41 = vmul.f32 1.442695, %v997_v56  ;;  %v3555_v3 = vld [vmem:[#allocation12_spill] sm:$0xff]  ;;  %v3557_v56 = vld [vmem:[#allocation7_spill] sm:$0xff] }
 0x322   : > { %2173 = vpow2.f32 %v1140_v33  ;;  %v1018_v38 = vsub.f32 %v2706_v2, %v955_v12 }
 0x323   : > { %2175 = vpow2.f32 %v1142_v25  ;;  %v992_v25 = vsub.f32 %v3552_v7, %v916_v4 }
 0x324   : > { %2177 = vpow2.f32 %v1126_v61  ;;  %v1019_v61 = vsub.f32 %v2708_v36, %v955_v12 }
 0x325   : > { %v949_v16 = vpop.xlane.xlu1 %948  ;;  %2179 = vpow2.f32 %v1116_v63  ;;  %v1092_v36 = vmul.f32 1.442695, %v992_v25 }
 0x326   : > { %v1014_v27 = vsub.f32 %v2692_v42, %v949_v16  ;;  %v1015_v48 = vsub.f32 %v2694_v18, %v949_v16  ;;  %2181 = vpow2.f32 %v1118_v43  ;;  %v1100_v43 = vmul.f32 1.442695, %v996_v50  ;;  %v910_v16 = vpop.xlane.xlu0 %909 }
 0x327   : > { %v2896_v10 = vpop.eup %2167  ;;  %2183 = vpow2.f32 %v1108_v46  ;;  %v993_v46 = vsub.f32 %v3555_v3, %v916_v4  ;;  %v1146_v12 = vmul.f32 1.442695, %v1019_v61  ;;  %v3558_v4 = vld [vmem:[#allocation19_spill] sm:$0xff] }
 0x328   : > { %v1136_v58 = vmul.f32 1.442695, %v1014_v27  ;;  %v1138_v59 = vmul.f32 1.442695, %v1015_v48  ;;  %v2899_v22 = vpop.eup %2169  ;;  %v1144_v27 = vmul.f32 1.442695, %v1018_v38 }
 0x329   : > { %v943_v30 = vpop.xlane.xlu1 %942  ;;  %v1232_v40 = vadd.f32 %v2899_v22, %v2896_v10  ;;  %v2911_v2 = vpop.eup %2171  ;;  %v3560_v38 = vld [vmem:[#allocation8_spill] sm:$0xff] }
 0x32a   : > { %2185 = vpow2.f32 %v1136_v58  ;;  %v1010_v42 = vsub.f32 %v2678_v21, %v943_v30  ;;  %v1011_v18 = vsub.f32 %v2680_v24, %v943_v30  ;;  %v3553_v21 = vld [vmem:[#allocation23_spill] sm:$0xff]  ;;  %3556 = vst [vmem:[#allocation21_spill] sm:$0xff] %v2911_v2  ;;  %v988_v30 = vsub.f32 %v3557_v56, %v910_v16 }
 0x32b   : > { %2187 = vpow2.f32 %v1138_v59  ;;  %1233 = vadd.xlane.f32.xlu0 %v1232_v40 }
 0x32c   : > { %v1128_v33 = vmul.f32 1.442695, %v1010_v42  ;;  %v1130_v60 = vmul.f32 1.442695, %v1011_v18  ;;  %2189 = vpow2.f32 %v1110_v53  ;;  %v3559_v18 = vld [vmem:[#allocation20_spill] sm:$0xff] }
 0x32d   : > { %v937_v63 = vpop.xlane.xlu1 %936 }
 0x32e   : > { %2191 = vpow2.f32 %v1128_v33  ;;  %v1006_v24 = vsub.f32 %v3553_v21, %v937_v63  ;;  %v1007_v15 = vsub.f32 %v3554_v0, %v937_v63  ;;  %v1084_v0 = vmul.f32 1.442695, %v988_v30 }
 0x32f   : > { %2193 = vpow2.f32 %v1130_v60  ;;  %v2913_v58 = vpop.eup %2173  ;;  %v989_v60 = vsub.f32 %v3560_v38, %v910_v16 }
 0x330   : > { %2195 = vpow2.f32 %v1100_v43  ;;  %v1120_v48 = vmul.f32 1.442695, %v1006_v24  ;;  %v1122_v50 = vmul.f32 1.442695, %v1007_v15  ;;  %v2915_v53 = vpop.eup %2175  ;;  %v1094_v43 = vmul.f32 1.442695, %v993_v46 }
 0x331   : > { %2197 = vpow2.f32 %v1102_v41  ;;  %v931_v59 = vpop.xlane.xlu1 %930  ;;  %v2920_v33 = vpop.eup %2177  ;;  %v1238_v41 = vadd.f32 %v2915_v53, %v2913_v58  ;;  %v3564_v15 = vld [vmem:[#allocation15_spill] sm:$0xff]  ;;  %v3565_v46 = vld [vmem:[#allocation16_spill] sm:$0xff] }
 0x332   : > { %2199 = vpow2.f32 %v1120_v48  ;;  %v1002_v42 = vsub.f32 %v3558_v4, %v931_v59  ;;  %v1003_v40 = vsub.f32 %v3559_v18, %v931_v59  ;;  %v2925_v7 = vpop.eup %2179 }
 0x333   : > { %2201 = vpow2.f32 %v1122_v50  ;;  %3561 = vst [vmem:[#allocation22_spill] sm:$0xff] %v2925_v7  ;;  %v2927_v61 = vpop.eup %2181  ;;  %1239 = vadd.xlane.f32.xlu0 %v1238_v41  ;;  %v1086_v50 = vmul.f32 1.442695, %v989_v60 }
 0x334   : > { %2203 = vpow2.f32 %v1144_v27  ;;  %v1112_v25 = vmul.f32 1.442695, %v1002_v42  ;;  %3562 = vst [vmem:[#allocation17_spill] sm:$0xff] %v2927_v61  ;;  %v1114_v63 = vmul.f32 1.442695, %v1003_v40  ;;  %v2929_v24 = vpop.eup %2183  ;;  %v1226_v27 = vadd.f32 %v2920_v33, %v2911_v2  ;;  %v3567_v42 = vld [vmem:[#allocation13_spill] sm:$0xff] }
 0x335   : > { %2205 = vpow2.f32 %v1146_v12  ;;  %v925_v21 = vpop.xlane.xlu1 %924  ;;  %3563 = vst [vmem:[#allocation18_spill] sm:$0xff] %v2929_v24  ;;  %v3568_v40 = vld [vmem:[#allocation14_spill] sm:$0xff]  ;;  %v1220_v60 = vadd.f32 %v2927_v61, %v2925_v7 }
 0x336   : > { %2207 = vpow2.f32 %v1092_v36  ;;  %v998_v3 = vsub.f32 %v3564_v15, %v925_v21  ;;  %v999_v16 = vsub.f32 %v3565_v46, %v925_v21  ;;  %v3571_v46 = vld [vmem:[#allocation9_spill] sm:$0xff] }
 0x337   : > { %v2933_v48 = vpop.eup %2185  ;;  %2209 = vpow2.f32 %v1094_v43  ;;  %1227 = vadd.xlane.f32.xlu0 %v1226_v27 }
 0x338   : > { %v2937_v59 = vpop.eup %2187  ;;  %2211 = vpow2.f32 %v1112_v25  ;;  %v1104_v12 = vmul.f32 1.442695, %v998_v3  ;;  %v1106_v56 = vmul.f32 1.442695, %v999_v16 }
 0x339   : > { %2213 = vpow2.f32 %v1114_v63  ;;  %v919_v36 = vpop.xlane.xlu1 %918  ;;  %v1235_v30 = vadd.f32 %v2937_v59, %v2933_v48  ;;  %v2941_v4 = vpop.eup %2189 }
 0x33a   : > { %3566 = vst [vmem:[#allocation11_spill] sm:$0xff] %v2941_v4  ;;  %2215 = vpow2.f32 %v1084_v0  ;;  %v994_v18 = vsub.f32 %v3567_v42, %v919_v36  ;;  %v995_v43 = vsub.f32 %v3568_v40, %v919_v36 }
 0x33b   : > { %v2945_v38 = vpop.eup %2191  ;;  %2217 = vpow2.f32 %v1086_v50  ;;  %1236 = vadd.xlane.f32.xlu1 %v1235_v30  ;;  %1221 = vadd.xlane.f32.xlu0 %v1220_v60  ;;  %v3572_v50 = vld [vmem:[#allocation10_spill] sm:$0xff] }
 0x33c   : > { %v2949_v41 = vpop.eup %2193  ;;  %2219 = vpow2.f32 %v1104_v12  ;;  %v1096_v25 = vmul.f32 1.442695, %v994_v18  ;;  %v1098_v21 = vmul.f32 1.442695, %v995_v43  ;;  %v1214_v12 = vadd.f32 %v2941_v4, %v2929_v24  ;;  %v421_v24 = vld [vmem:[%s3477_s3 + $0x38] sm:$0xff] }
 0x33d   : > { %v2951_v63 = vpop.eup %2195  ;;  %2221 = vpow2.f32 %v1106_v56  ;;  %v913_v0 = vpop.xlane.xlu1 %912  ;;  %v1229_v15 = vadd.f32 %v2949_v41, %v2945_v38 }
 0x33e   : > { %3569 = vst [vmem:[#allocation23_spill] sm:$0xff] %v2951_v63  ;;  %v2955_v3 = vpop.eup %2197  ;;  %v990_v16 = vsub.f32 %v3571_v46, %v913_v0  ;;  %v991_v27 = vsub.f32 %v3572_v50, %v913_v0  ;;  %2223 = vpow2.f32 %v1096_v25 }
 0x33f   : > { %3570 = vst [vmem:[#allocation24_spill] sm:$0xff] %v2955_v3  ;;  %v2959_v36 = vpop.eup %2199  ;;  %1230 = vadd.xlane.f32.xlu1 %v1229_v15  ;;  %2225 = vpow2.f32 %v1098_v21  ;;  %1215 = vadd.xlane.f32.xlu0 %v1214_v12  ;;  %v1208_v0 = vadd.f32 %v2955_v3, %v2951_v63 }
 0x340   : > { %3573 = vst [vmem:[#allocation12_spill] sm:$0xff] %v2959_v36  ;;  %v2963_v30 = vpop.eup %2201  ;;  %v1088_v56 = vmul.f32 1.442695, %v990_v16  ;;  %v1090_v18 = vmul.f32 1.442695, %v991_v27 }
 0x341   : > { %v2965_v42 = vpop.eup %2203  ;;  %v1223_v40 = vadd.f32 %v2963_v30, %v2959_v36 }
 0x342   : > { %v2969_v43 = vpop.eup %2205  ;;  %2227 = vpow2.f32 %v1088_v56 }
 0x343   : > { %v2971_v60 = vpop.eup %2207  ;;  %1224 = vadd.xlane.f32.xlu1 %v1223_v40  ;;  %2229 = vpow2.f32 %v1090_v18  ;;  %1209 = vadd.xlane.f32.xlu0 %v1208_v0  ;;  %v1241_v21 = vadd.f32 %v2969_v43, %v2965_v42 }
 0x344   : > { %3574 = vst [vmem:[#allocation7_spill] sm:$0xff] %v2971_v60  ;;  %v2975_v15 = vpop.eup %2209 }
 0x345   : > { %3575 = vst [vmem:[#allocation19_spill] sm:$0xff] %v2975_v15  ;;  %v2977_v25 = vpop.eup %2211  ;;  %v1202_v50 = vadd.f32 %v2975_v15, %v2971_v60 }
 0x346   : > { %3576 = vst [vmem:[#allocation20_spill] sm:$0xff] %v2977_v25  ;;  %v2981_v46 = vpop.eup %2213 }
 0x347   : > { %3577 = vst [vmem:[#allocation8_spill] sm:$0xff] %v2981_v46  ;;  %v2983_v16 = vpop.eup %2215  ;;  %1242 = vadd.xlane.f32.xlu1 %v1241_v21  ;;  %1203 = vadd.xlane.f32.xlu0 %v1202_v50  ;;  %v1217_v56 = vadd.f32 %v2981_v46, %v2977_v25  ;;  %v1694_v25 = vld [vmem:[%s3479_s5 + $0x20] sm:$0xff] }
 0x348   : > { %3578 = vst [vmem:[#allocation15_spill] sm:$0xff] %v2983_v16  ;;  %v2987_v27 = vpop.eup %2217 }
 0x349   : > { %3579 = vst [vmem:[#allocation16_spill] sm:$0xff] %v2987_v27  ;;  %v2989_v12 = vpop.eup %2219  ;;  %v1196_v40 = vadd.f32 %v2987_v27, %v2983_v16 }
 0x34a   : > { %3580 = vst [vmem:[#allocation13_spill] sm:$0xff] %v2989_v12  ;;  %v2993_v18 = vpop.eup %2221 }
 0x34b   : > { %3581 = vst [vmem:[#allocation14_spill] sm:$0xff] %v2993_v18  ;;  %1218 = vadd.xlane.f32.xlu1 %v1217_v56  ;;  %v2997_v0 = vpop.eup %2223  ;;  %1197 = vadd.xlane.f32.xlu0 %v1196_v40  ;;  %v1211_v21 = vadd.f32 %v2993_v18, %v2989_v12  ;;  %v414_v40 = vld [vmem:[%s3477_s3] sm:$0xff] }
 0x34c   : > { %3582 = vst [vmem:[#allocation9_spill] sm:$0xff] %v2997_v0  ;;  %v3001_v63 = vpop.eup %2225 }
 0x34d   : > { %3583 = vst [vmem:[#allocation10_spill] sm:$0xff] %v3001_v63  ;;  %v1205_v50 = vadd.f32 %v3001_v63, %v2997_v0  ;;  %v415_v0 = vld [vmem:[%s3477_s3 + $0x8] sm:$0xff]  ;;  %v417_v63 = vld [vmem:[%s3477_s3 + $0x18] sm:$0xff] }
 0x34f   : > { %1212 = vadd.xlane.f32.xlu1 %v1211_v21  ;;  %v3003_v60 = vpop.eup %2227  ;;  %v1691_v21 = vld [vmem:[%s3479_s5 + $0x8] sm:$0xff] }
 0x350   : > { %3584 = vst [vmem:[#allocation26_spill] sm:$0xff] %v3003_v60  ;;  %v3007_v15 = vpop.eup %2229 }
 0x351   : > { %3585 = vst [vmem:[#allocation27_spill] sm:$0xff] %v3007_v15  ;;  %v1199_v56 = vadd.f32 %v3007_v15, %v3003_v60  ;;  %v1690_v60 = vld [vmem:[%s3479_s5] sm:$0xff] }
 0x353   : > { %1206 = vadd.xlane.f32.xlu1 %v1205_v50  ;;  %v1693_v50 = vld [vmem:[%s3479_s5 + $0x18] sm:$0xff] }
 0x357   : > { %1200 = vadd.xlane.f32.xlu1 %v1199_v56  ;;  %v416_v56 = vld [vmem:[%s3477_s3 + $0x10] sm:$0xff] }
 0x361   : > { %424 = vperm.xlu0 %2092, %v414_v40   ;;  %v1695_v40 = vld [vmem:[%s3479_s5 + $0x28] sm:$0xff] }
 0x365   : > { %1705 = vperm.xlu0 %2092, %v1691_v21   ;;  %v418_v21 = vld [vmem:[%s3477_s3 + $0x20] sm:$0xff] }
 0x368   : > { %429 = vperm.xlu1 %2093, %v415_v0   ;;  %v1697_v0 = vld [vmem:[%s3479_s5 + $0x38] sm:$0xff] }
 0x369   : > { %1715 = vperm.xlu0 %2092, %v1693_v50   ;;  %v419_v50 = vld [vmem:[%s3477_s3 + $0x28] sm:$0xff] }
 0x36c   : > { %434 = vperm.xlu1 %2093, %v416_v56  }
 0x36d   : > { %1725 = vperm.xlu0 %2092, %v1695_v40  }
 0x370   : > { %439 = vperm.xlu1 %2093, %v417_v63   ;;  %v420_v63 = vld [vmem:[%s3477_s3 + $0x30] sm:$0xff] }
 0x371   : > { %1735 = vperm.xlu0 %2092, %v1697_v0  }
 0x374   : > { %444 = vperm.xlu1 %2093, %v418_v21   ;;  %v1186_v56 = vpop.xlane.xlu0 %1185 }
 0x378   : > { %449 = vperm.xlu1 %2093, %v419_v50   ;;  %v1189_v12 = vpop.xlane.xlu1 %1188 }
 0x379   : > { %2231 = vrcp.f32 %v1189_v12 }
 0x37c   : > { %v1192_v40 = vpop.xlane.xlu0 %1191  ;;  %454 = vperm.xlu1 %2093, %v420_v63   ;;  %v1183_v3 = vpop.xlane.xlu1 %1182  ;;  %v1692_v63 = vld [vmem:[%s3479_s5 + $0x10] sm:$0xff] }
 0x37d   : > { %2233 = vrcp.f32 %v1192_v40 }
 0x37e   : > { %2235 = vrcp.f32 %v1186_v56  ;;  %v1696_v56 = vld [vmem:[%s3479_s5 + $0x30] sm:$0xff] }
 0x380   : > { %v1180_v0 = vpop.xlane.xlu0 %1179  ;;  %459 = vperm.xlu1 %2093, %v421_v24   ;;  %v1177_v21 = vpop.xlane.xlu1 %1176 }
 0x384   : > { %v1174_v50 = vpop.xlane.xlu0 %1173  ;;  %1700 = vperm.xlu1 %2093, %v1690_v60   ;;  %v1195_v15 = vpop.xlane.xlu1 %1194 }
 0x385   : > { %2237 = vrcp.f32 %v1195_v15 }
 0x386   : > { %2239 = vrcp.f32 %v1180_v0  ;;  %v2232_v40 = vpop.eup %2231 }
 0x387   : > { %2241 = vrcp.f32 %v1183_v3 }
 0x388   : > { %v1168_v18 = vpop.xlane.xlu0 %1167  ;;  %1710 = vperm.xlu1 %2093, %v1692_v63   ;;  %v1171_v24 = vpop.xlane.xlu1 %1170  ;;  %2243 = vrcp.f32 %v1174_v50 }
 0x389   : > { %2245 = vrcp.f32 %v1177_v21 }
 0x38a   : > { %2247 = vrcp.f32 %v1168_v18  ;;  %v2234_v15 = vpop.eup %2233 }
 0x38b   : > { %2249 = vrcp.f32 %v1171_v24  ;;  %v2236_v16 = vpop.eup %2235  ;;  %v3060_v3 = vmul.f32 %v2234_v15, %v2805_v11  ;;  %v3069_v24 = vmul.f32 %v2234_v15, %v2803_v44 }
 0x38c   : > { %v1162_v12 = vpop.xlane.xlu0 %1161  ;;  %1720 = vperm.xlu1 %2093, %v1694_v25   ;;  %v1165_v60 = vpop.xlane.xlu1 %1164  ;;  %v3063_v25 = vmul.f32 %v2232_v40, %v2793_v29  ;;  %v3090_v15 = vmul.f32 %v2236_v16, %v2777_v26 }
 0x38d   : > { %2251 = vrcp.f32 %v1162_v12 }
 0x38e   : > { %2253 = vrcp.f32 %v1165_v60  ;;  %v3079_v60 = vmul.f32 %v2236_v16, %v2781_v35 }
 0x390   : > { %v1156_v0 = vpop.xlane.xlu0 %1155  ;;  %1730 = vperm.xlu1 %2093, %v1696_v56   ;;  %v1159_v63 = vpop.xlane.xlu1 %1158  ;;  %v1427_v44 = vpack.c.bf16 %v3063_v25, %v3079_v60 }
 0x391   : > { %2255 = vrcp.f32 %v1156_v0  ;;  %v3082_v0 = vmul.f32 %v2232_v40, %v2790_v34 }
 0x392   : > { %v2238_v4 = vpop.eup %2237 }
 0x393   : > { %v3066_v18 = vmul.f32 %v2238_v4, %v2827_v49  ;;  %v3072_v56 = vmul.f32 %v2238_v4, %v2821_v9  ;;  %v2240_v12 = vpop.eup %2239  ;;  %v1426_v40 = vpack.c.bf16 %v3082_v0, %v3090_v15 }
 0x394   : > { %v1150_v50 = vpop.xlane.xlu0 %1149  ;;  %v1153_v21 = vpop.xlane.xlu1 %1152  ;;  %v3087_v9 = vmul.f32 %v2240_v12, %v2813_v55  ;;  %v3586_v55 = vmov 0 }
 0x395   : > { %2257 = vrcp.f32 %v1150_v50  ;;  %v1429_v11 = vpack.c.bf16 %v3066_v18, %v3060_v3  ;;  %v1428_v29 = vpack.c.bf16 %v3072_v56, %v3069_v24  ;;  %v2242_v49 = vpop.eup %2241  ;;  %v3517_v50 = vlaneseq }
 0x396   : > { %2259 = vrcp.f32 %v1153_v21  ;;  %v2244_v4 = vpop.eup %2243  ;;  %v3093_v35 = vmul.f32 %v2242_v49, %v2799_v52  ;;  %v2378_v52 = vmov 0.0  }
 0x397   : > { %2261 = vrcp.f32 %v1159_v63  ;;  %1487 = vmatprep.subr.bf16.mxu1 %v1429_v11  ;;  %v2246_v34 = vpop.eup %2245  ;;  %v3098_v63 = vmul.f32 %v2240_v12, %v2807_v47  ;;  %vm3101_vm2 = vcmp.lt.s32.totalorder %v3517_v50, 256  ;;  %v3108_v16 = vmul.f32 %v2244_v4, %v2819_v6 }
 0x398   : > { %1488 = vmatpush1.bf16.msra.mxu1 %v1428_v29  ;;  %v3587_v55 = vsel %vm3101_vm2, 4294967295, %v3586_v55  ;;  %v2248_v21 = vpop.eup %2247  ;;  %v1425_v26 = vpack.c.bf16 %v3093_v35, %v3087_v9  ;;  %363 = vst.msk [vmem:[#allocation3] sm:$0x3] %vm3101_vm2, %v2378_v52  ;;  %v3113_v47 = vmul.f32 %v2242_v49, %v2795_v32  ;;  %v3116_v12 = vmul.f32 %v2246_v34, %v2787_v17 }
 0x399   : > { %1489 = vmatprep.subr.bf16.mxu1 %v1427_v44  ;;  %3588 = vst [vmem:[#allocation28_spill] sm:$0xff] %v3587_v55  ;;  %v2250_v11 = vpop.eup %2249  ;;  %v1292_v29 = vmul.f32 %v2244_v4, %v2817_v62  ;;  %v1294_v52 = vmul.f32 %v2246_v34, %v2773_v39  ;;  %v1288_v62 = vmul.f32 %v2248_v21, %v2831_v1 }
 0x39a   : > { %v2252_v44 = vpop.eup %2251  ;;  %v1424_v6 = vpack.c.bf16 %v3113_v47, %v3098_v63  ;;  %v1423_v55 = vpack.c.bf16 %v3116_v12, %v3108_v16  ;;  %v1291_v32 = vmul.f32 %v2250_v11, %v2841_v13  ;;  %v1290_v4 = vmul.f32 %v2250_v11, %v2835_v45 }
 0x39b   : > { %v2254_v50 = vpop.eup %2253  ;;  %v1285_v27 = vmul.f32 %v2252_v44, %v2845_v57 }
 0x39c   : > { %1490 = vmatpush1.bf16.msra.mxu1 %v1426_v40  ;;  %v1289_v40 = vmul.f32 %v2248_v21, %v2833_v8  ;;  %v1287_v46 = vmul.f32 %v2254_v50, %v2853_v14  ;;  %v1420_v11 = vpack.c.bf16 %v1290_v4, %v1288_v62 }
 0x39d   : > { %1491 = vmatprep.subr.bf16.mxu1 %v1425_v26  ;;  %v1422_v26 = vpack.c.bf16 %v1294_v52, %v1292_v29 }
 0x39e   : > { %v2256_v49 = vpop.eup %2255  ;;  %v1421_v34 = vpack.c.bf16 %v1291_v32, %v1289_v40  ;;  %v1419_v14 = vpack.c.bf16 %v1287_v46, %v1285_v27 }
 0x39f   : > { %v1281_v1 = vmul.f32 %v2256_v49, %v2857_v20  ;;  %v1280_v45 = vmul.f32 %v2256_v49, %v2855_v19 }
 0x3a0   : > { %1492 = vmatpush1.bf16.msra.mxu1 %v1424_v6 }
 0x3a1   : > { %1493 = vmatprep.subr.bf16.mxu1 %v1423_v55 }
 0x3a2   : > { %v2258_v17 = vpop.eup %2257 }
 0x3a3   : > { %v2260_v7 = vpop.eup %2259  ;;  %v1277_v39 = vmul.f32 %v2258_v17, %v2873_v23  ;;  %v1276_v8 = vmul.f32 %v2258_v17, %v2867_v37  ;;  %v1284_v23 = vmul.f32 %v2252_v44, %v2843_v51  ;;  %v1286_v37 = vmul.f32 %v2254_v50, %v2847_v31 }
 0x3a4   : > { %v1279_v13 = vmul.f32 %v2260_v7, %v2877_v5  ;;  %v1278_v6 = vmul.f32 %v2260_v7, %v2875_v54  ;;  %v2262_v55 = vpop.eup %2261  ;;  %1494 = vmatpush1.bf16.msra.mxu1 %v1422_v26  ;;  %v3589_v5 = vld [vmem:[#allocation25_spill] sm:$0xff] }
 0x3a5   : > { %1495 = vmatprep.subr.bf16.mxu1 %v1421_v34  ;;  %v1283_v17 = vmul.f32 %v2262_v55, %v2865_v28  ;;  %v1282_v36 = vmul.f32 %v2262_v55, %v3589_v5  ;;  %v1418_v34 = vpack.c.bf16 %v1286_v37, %v1284_v23 }
 0x3a6   : > { %v1377_v21 = vadd.f32 %v1279_v13, %v1277_v39  ;;  %v1340_v57 = vadd.f32 %v1278_v6, %v1276_v8  ;;  %v1415_v50 = vpack.c.bf16 %v1279_v13, %v1277_v39 }
 0x3a7   : > { %v1417_v19 = vpack.c.bf16 %v1283_v17, %v1281_v1  ;;  %v1416_v44 = vpack.c.bf16 %v1282_v36, %v1280_v45 }
 0x3a8   : > { %v1378_v54 = vadd.f32 %v1377_v21, %v1281_v1  ;;  %v1341_v7 = vadd.f32 %v1340_v57, %v1280_v45  ;;  %1496 = vmatpush1.bf16.msra.mxu1 %v1420_v11  ;;  %v1414_v57 = vpack.c.bf16 %v1278_v6, %v1276_v8 }
 0x3a9   : > { %1497 = vmatprep.subr.bf16.mxu1 %v1419_v14 }
 0x3aa   : > { %v1379_v26 = vadd.f32 %v1378_v54, %v1283_v17  ;;  %v1342_v20 = vadd.f32 %v1341_v7, %v1282_v36 }
 0x3ac   : > { %v1380_v49 = vadd.f32 %v1379_v26, %v1285_v27  ;;  %v1343_v61 = vadd.f32 %v1342_v20, %v1284_v23  ;;  %1498 = vmatpush1.bf16.msra.mxu1 %v1418_v34 }
 0x3ad   : > { %1499 = vmatprep.subr.bf16.mxu1 %v1417_v19 }
 0x3ae   : > { %v1381_v2 = vadd.f32 %v1380_v49, %v1287_v46  ;;  %v1344_v51 = vadd.f32 %v1343_v61, %v1286_v37 }
 0x3b0   : > { %v1382_v31 = vadd.f32 %v1381_v2, %v1289_v40  ;;  %v1345_v28 = vadd.f32 %v1344_v51, %v1288_v62  ;;  %1500 = vmatpush1.bf16.msra.mxu1 %v1416_v44 }
 0x3b1   : > { %1501 = vmatprep.subr.bf16.mxu1 %v1415_v50 }
 0x3b2   : > { %v1383_v55 = vadd.f32 %v1382_v31, %v1291_v32  ;;  %v1346_v21 = vadd.f32 %v1345_v28, %v1290_v4 }
 0x3b4   : > { %v1384_v11 = vadd.f32 %v1383_v55, %v3108_v16  ;;  %v1347_v14 = vadd.f32 %v1346_v21, %v1292_v29  ;;  %1502 = vmatpush1.bf16.msra.mxu1 %v1414_v57  ;;  %v1234_v36 = vpop.xlane.xlu0 %1233 }
 0x3b6   : > { %v1385_v27 = vadd.f32 %v1384_v11, %v3116_v12  ;;  %v1348_v1 = vadd.f32 %v1347_v14, %v1294_v52 }
 0x3b8   : > { %v1386_v23 = vadd.f32 %v1385_v27, %v3087_v9  ;;  %v1349_v61 = vadd.f32 %v1348_v1, %v3098_v63 }
 0x3ba   : > { %v1387_v2 = vadd.f32 %v1386_v23, %v3093_v35  ;;  %v1350_v46 = vadd.f32 %v1349_v61, %v3113_v47 }
 0x3bc   : > { %v1388_v40 = vadd.f32 %v1387_v2, %v3079_v60  ;;  %v1351_v32 = vadd.f32 %v1350_v46, %v3090_v15  ;;  %v1240_v62 = vpop.xlane.xlu0 %1239 }
 0x3bd   : > { %2263 = vrcp.f32 %v1240_v62 }
 0x3be   : > { %v1389_v16 = vadd.f32 %v1388_v40, %v3063_v25  ;;  %v1352_v29 = vadd.f32 %v1351_v32, %v3082_v0  ;;  %v3158_v0 = vpop.f32.mrf.mxu1 }
 0x3c0   : > { %v1390_v12 = vadd.f32 %v1389_v16, %v3060_v3  ;;  %v1353_v9 = vadd.f32 %v1352_v29, %v3069_v24  ;;  %v1228_v52 = vpop.xlane.xlu0 %1227  ;;  %v3592_v16 = vld [vmem:[#allocation17_spill] sm:$0xff] }
 0x3c2   : > { %v3153_v63 = vadd.f32 %v1390_v12, %v3066_v18  ;;  %v3156_v35 = vadd.f32 %v1353_v9, %v3072_v56  ;;  %v531_v18 = vpop.f32.mrf.mxu1  ;;  %v3593_v12 = vld [vmem:[#allocation12_spill] sm:$0xff] }
 0x3c4   : > { %v1237_v47 = vpop.xlane.xlu1 %1236  ;;  %v1222_v60 = vpop.xlane.xlu0 %1221 }
 0x3c5   : > { %2265 = vrcp.f32 %v1237_v47  ;;  %v3160_v56 = vpop.f32.mrf.mxu1 }
 0x3c6   : > { %2267 = vrcp.f32 %v1234_v36 }
 0x3c7   : > { %v535_v37 = vpop.f32.mrf.mxu1 }
 0x3c8   : > { %v1231_v4 = vpop.xlane.xlu1 %1230  ;;  %v1216_v15 = vpop.xlane.xlu0 %1215 }
 0x3c9   : > { %v3177_v51 = vpop.f32.mrf.mxu1 }
 0x3ca   : > { %v2264_v45 = vpop.eup %2263 }
 0x3cb   : > { %v3163_v26 = vmul.f32 %v2264_v45, %v2915_v53  ;;  %v3166_v20 = vmul.f32 %v2264_v45, %v2913_v58  ;;  %v3193_v55 = vpop.f32.mrf.mxu1 }
 0x3cc   : > { %v1225_v39 = vpop.xlane.xlu1 %1224  ;;  %v1210_v25 = vpop.xlane.xlu0 %1209 }
 0x3cd   : > { %v3215_v2 = vpop.f32.mrf.mxu1 }
 0x3d0   : > { %v1243_v3 = vpop.xlane.xlu1 %1242  ;;  %v1204_v24 = vpop.xlane.xlu0 %1203 }
 0x3d1   : > { %2269 = vrcp.f32 %v1243_v3  ;;  %v3596_v3 = vld [vmem:[#allocation22_spill] sm:$0xff] }
 0x3d2   : > { %2271 = vrcp.f32 %v1231_v4  ;;  %v2266_v17 = vpop.eup %2265 }
 0x3d3   : > { %2273 = vrcp.f32 %v1228_v52  ;;  %v2268_v54 = vpop.eup %2267  ;;  %v3175_v49 = vmul.f32 %v2266_v17, %v2937_v59  ;;  %v3187_v50 = vmul.f32 %v2266_v17, %v2933_v48  ;;  %v3594_v52 = vld [vmem:[#allocation8_spill] sm:$0xff] }
 0x3d4   : > { %v1219_v8 = vpop.xlane.xlu1 %1218  ;;  %2275 = vrcp.f32 %v1225_v39  ;;  %v1198_v13 = vpop.xlane.xlu0 %1197  ;;  %v3202_v48 = vmul.f32 %v2268_v54, %v2896_v10 }
 0x3d5   : > { %2277 = vrcp.f32 %v1222_v60  ;;  %v3234_v60 = vpop.f32.mrf.mxu1 }
 0x3d6   : > { %2279 = vrcp.f32 %v1219_v8 }
 0x3d7   : > { %2281 = vrcp.f32 %v1198_v13  ;;  %v3598_v13 = vld [vmem:[#allocation15_spill] sm:$0xff] }
 0x3d8   : > { %v1213_v6 = vpop.xlane.xlu1 %1212  ;;  %2283 = vrcp.f32 %v1216_v15  ;;  %v3595_v15 = vld [vmem:[#allocation16_spill] sm:$0xff] }
 0x3d9   : > { %2285 = vrcp.f32 %v1210_v25 }
 0x3da   : > { %2287 = vrcp.f32 %v1213_v6 }
 0x3db   : > { %2289 = vrcp.f32 %v1204_v24 }
 0x3dc   : > { %v1207_v5 = vpop.xlane.xlu1 %1206  ;;  %v3189_v59 = vpop.permute.xlu0 %424 }
 0x3dd   : > { %v532_v57 = vadd.f32 %v531_v18, %v3189_v59  ;;  %v3597_v18 = vld [vmem:[#allocation11_spill] sm:$0xff] }
 0x3de   : > { %v2270_v7 = vpop.eup %2269 }
 0x3df   : > { %v3169_v34 = vmul.f32 %v2270_v7, %v2969_v43  ;;  %v3172_v19 = vmul.f32 %v2270_v7, %v2965_v42  ;;  %v2272_v44 = vpop.eup %2271  ;;  %v3184_v43 = vmul.f32 %v2268_v54, %v2899_v22  ;;  %v3599_v7 = vld [vmem:[#allocation20_spill] sm:$0xff] }
 0x3e0   : > { %v1201_v31 = vpop.xlane.xlu1 %1200  ;;  %v2274_v42 = vpop.eup %2273  ;;  %v3196_v21 = vmul.f32 %v2272_v44, %v2949_v41  ;;  %v1442_v41 = vpack.c.bf16 %v3187_v50, %v3202_v48  ;;  %v3211_v23 = vmul.f32 %v2272_v44, %v2945_v38 }
 0x3e1   : > { %3590 = vst [vmem:[#allocation25_spill] sm:$0xff] %v3172_v19  ;;  %2291 = vrcp.f32 %v1201_v31  ;;  %v1445_v58 = vpack.c.bf16 %v3169_v34, %v3163_v26  ;;  %v1444_v53 = vpack.c.bf16 %v3172_v19, %v3166_v20  ;;  %v1443_v28 = vpack.c.bf16 %v3175_v49, %v3184_v43  ;;  %v2276_v22 = vpop.eup %2275  ;;  %v3252_v31 = vpop.f32.mrf.mxu1 }
 0x3e2   : > { %2293 = vrcp.f32 %v1207_v5  ;;  %v3206_v27 = vmul.f32 %v2274_v42, %v2920_v33  ;;  %v2278_v1 = vpop.eup %2277  ;;  %v3218_v46 = vmul.f32 %v2276_v22, %v2963_v30  ;;  %v3591_v33 = vld [vmem:[#allocation21_spill] sm:$0xff]  ;;  %v3229_v9 = vmul.f32 %v2276_v22, %v3593_v12  ;;  %v3602_v22 = vld [vmem:[#allocation26_spill] sm:$0xff] }
 0x3e3   : > { %1503 = vmatprep.subr.bf16.mxu1 %v1445_v58  ;;  %v2280_v61 = vpop.eup %2279  ;;  %v3221_v32 = vmul.f32 %v2274_v42, %v3591_v33  ;;  %v3224_v38 = vmul.f32 %v2278_v1, %v3592_v16  ;;  %v3240_v24 = vmul.f32 %v2278_v1, %v3596_v3  ;;  %v3600_v58 = vld [vmem:[#allocation14_spill] sm:$0xff]  ;;  %v3601_v42 = vld [vmem:[#allocation27_spill] sm:$0xff] }
 0x3e4   : > { %1504 = vmatpush2.bf16.msra.mxu1 %v1444_v53  ;;  %v3199_v11 = vpop.permute.xlu1 %429  ;;  %v1441_v36 = vpack.c.bf16 %v3196_v21, %v3206_v27  ;;  %v2282_v40 = vpop.eup %2281  ;;  %v3232_v47 = vmul.f32 %v2280_v61, %v3594_v52  ;;  %v1322_v44 = vmul.f32 %v2280_v61, %v3599_v7  ;;  %v3605_v33 = vld [vmem:[#allocation19_spill] sm:$0xff]  ;;  %v3606_v52 = vld [vmem:[#allocation13_spill] sm:$0xff] }
 0x3e5   : > { %v536_v14 = vadd.f32 %v535_v37, %v3199_v11  ;;  %1505 = vmatprep.subr.bf16.mxu1 %v1443_v28  ;;  %v2284_v62 = vpop.eup %2283  ;;  %v1440_v29 = vpack.c.bf16 %v3211_v23, %v3221_v32  ;;  %v1439_v4 = vpack.c.bf16 %v3218_v46, %v3224_v38  ;;  %v1309_v39 = vmul.f32 %v2282_v40, %v3595_v15  ;;  %v3607_v15 = vld [vmem:[#allocation7_spill] sm:$0xff] }
 0x3e6   : > { %v2286_v30 = vpop.eup %2285  ;;  %v1321_v8 = vmul.f32 %v2284_v62, %v3597_v18  ;;  %v3244_v6 = vmul.f32 %v2282_v40, %v3598_v13  ;;  %v1438_v5 = vpack.c.bf16 %v3229_v9, %v3240_v24  ;;  %v3604_v40 = vld [vmem:[#allocation24_spill] sm:$0xff]  ;;  %v551_v13 = vpop.f32.mrf.mxu1 }
 0x3e7   : > { %v569_v10 = vpack.c.bf16 %v536_v14, %v532_v57  ;;  %v2288_v25 = vpop.eup %2287  ;;  %v1392_v57 = vadd.f32 %v3153_v63, %v1309_v39  ;;  %v1317_v61 = vmul.f32 %v2286_v30, %v3604_v40 }
 0x3e8   : > { %1506 = vmatpush2.bf16.msra.mxu1 %v1442_v41  ;;  %v2290_v45 = vpop.eup %2289  ;;  %v3246_v37 = vpop.permute.xlu1 %434  ;;  %v1437_v54 = vpack.c.bf16 %v3232_v47, %v1321_v8  ;;  %v1319_v53 = vmul.f32 %v2288_v25, %v3600_v58  ;;  %v3603_v41 = vld [vmem:[#allocation18_spill] sm:$0xff]  ;;  %v3610_v58 = vld [vmem:[#allocation9_spill] sm:$0xff] }
 0x3e9   : > { %1507 = vmatprep.subr.bf16.mxu1 %v1441_v36  ;;  %1519 = vmatprep.mubr.bf16.mxu1 %v569_v10  ;;  %v1320_v36 = vmul.f32 %v2284_v62, %v3603_v41  ;;  %v1355_v10 = vadd.f32 %v3156_v35, %v3244_v6  ;;  %v1313_v16 = vmul.f32 %v2290_v45, %v3605_v33  ;;  %v3609_v35 = vld [vmem:[#allocation23_spill] sm:$0xff] }
 0x3ea   : > { %v1312_v63 = vmul.f32 %v2290_v45, %v3607_v15 }
 0x3eb   : > { %v1436_v12 = vpack.c.bf16 %v1322_v44, %v1320_v36 }
 0x3ec   : > { %1508 = vmatpush2.bf16.msra.mxu1 %v1440_v29  ;;  %v440_v18 = vpop.permute.xlu1 %439 }
 0x3ed   : > { %1509 = vmatprep.subr.bf16.mxu1 %v1439_v4  ;;  %v1318_v4 = vmul.f32 %v2288_v25, %v3606_v52  ;;  %v553_v25 = vpop.f32.mrf.mxu1 }
 0x3ee   : > { %v2292_v17 = vpop.eup %2291 }
 0x3ef   : > { %v1311_v28 = vmul.f32 %v2292_v17, %v3601_v42  ;;  %v1310_v14 = vmul.f32 %v2292_v17, %v3602_v22  ;;  %v2294_v1 = vpop.eup %2293  ;;  %v1435_v17 = vpack.c.bf16 %v1319_v53, %v1317_v61 }
 0x3f0   : > { %1510 = vmatpush2.bf16.msra.mxu1 %v1438_v5  ;;  %v3608_v5 = vld [vmem:[#allocation10_spill] sm:$0xff]  ;;  %v1314_v42 = vmul.f32 %v2294_v1, %v3610_v58  ;;  %v445_v52 = vpop.permute.xlu1 %444  ;;  %v3611_v58 = vld [vmem:[#allocation25_spill] sm:$0xff] }
 0x3f1   : > { %1511 = vmatprep.subr.bf16.mxu1 %v1437_v54  ;;  %v1393_v29 = vadd.f32 %v1392_v57, %v1311_v28  ;;  %v1356_v3 = vadd.f32 %v1355_v10, %v1310_v14  ;;  %v1315_v62 = vmul.f32 %v2294_v1, %v3608_v5  ;;  %v1316_v54 = vmul.f32 %v2286_v30, %v3609_v35 }
 0x3f2   : > { %v1432_v5 = vpack.c.bf16 %v1314_v42, %v1312_v63  ;;  %v1431_v30 = vpack.c.bf16 %v1311_v28, %v1309_v39 }
 0x3f3   : > { %v1394_v7 = vadd.f32 %v1393_v29, %v1313_v16  ;;  %v1357_v22 = vadd.f32 %v1356_v3, %v1312_v63  ;;  %v1434_v41 = vpack.c.bf16 %v1318_v4, %v1316_v54  ;;  %v1433_v33 = vpack.c.bf16 %v1315_v62, %v1313_v16 }
 0x3f4   : > { %1512 = vmatpush2.bf16.msra.mxu1 %v1436_v12  ;;  %v555_v12 = vpop.f32.mrf.mxu1  ;;  %v534_v3 = vadd.f32 %v3160_v56, %v3199_v11  ;;  %v542_v16 = vadd.f32 %v3193_v55, %v3246_v37  ;;  %v450_v39 = vpop.permute.xlu1 %449 }
 0x3f5   : > { %1513 = vmatprep.subr.bf16.mxu1 %v1435_v17  ;;  %v1395_v57 = vadd.f32 %v1394_v7, %v1315_v62  ;;  %v1358_v40 = vadd.f32 %v1357_v22, %v1314_v42  ;;  %v530_v17 = vadd.f32 %v3158_v0, %v3189_v59 }
 0x3f6   : > { %v559_v28 = vpop.f32.mrf.mxu1 }
 0x3f7   : > { %v1396_v45 = vadd.f32 %v1395_v57, %v1317_v61  ;;  %v1359_v10 = vadd.f32 %v1358_v40, %v1316_v54  ;;  %v568_v11 = vpack.c.bf16 %v534_v3, %v530_v17 }
 0x3f8   : > { %1514 = vmatpush2.bf16.msra.mxu1 %v1434_v41 }
 0x3f9   : > { %1515 = vmatprep.subr.bf16.mxu1 %v1433_v33  ;;  %v1397_v15 = vadd.f32 %v1396_v45, %v1319_v53  ;;  %v1360_v29 = vadd.f32 %v1359_v10, %v1318_v4  ;;  %v546_v53 = vadd.f32 %v3234_v60, %v440_v18 }
 0x3fb   : > { %v1398_v19 = vadd.f32 %v1397_v15, %v1321_v8  ;;  %v1361_v1 = vadd.f32 %v1360_v29, %v1320_v36  ;;  %v1430_v8 = vpack.c.bf16 %v1310_v14, %v3244_v6  ;;  %v540_v6 = vadd.f32 %v3177_v51, %v3246_v37 }
 0x3fc   : > { %1516 = vmatpush2.bf16.msra.mxu1 %v1432_v5  ;;  %v552_v14 = vadd.f32 %v551_v13, %v445_v52  ;;  %v554_v13 = vadd.f32 %v553_v25, %v450_v39  ;;  %v3612_v15 = vlaneseq }
 0x3fd   : > { %v1399_v61 = vadd.f32 %v1398_v19, %v3232_v47  ;;  %1517 = vmatprep.subr.bf16.mxu1 %v1431_v30  ;;  %v1362_v4 = vadd.f32 %v1361_v1, %v1322_v44  ;;  %v571_v19 = vpack.c.bf16 %v546_v53, %v542_v16  ;;  %v561_v47 = vpop.f32.mrf.mxu1  ;;  %v3613_v16 = vmov 0  }
 0x3fe   : > { %v1454_v5 = vshrl.u32 %v3612_v15, 7 }
 0x3ff   : > { %v1400_v36 = vadd.f32 %v1399_v61, %v3224_v38  ;;  %v1363_v56 = vadd.f32 %v1362_v4, %v3240_v24  ;;  %v544_v38 = vadd.f32 %v3215_v2, %v440_v18  ;;  %v455_v24 = vpop.permute.xlu1 %454  ;;  %v1446_v4 = vld [vmem:[#allocation3] sm:$0x3] }
 0x400   : > { %1518 = vmatpush2.bf16.msra.mxu1 %v1430_v8 }
 0x401   : > { %v1401_v0 = vadd.f32 %v1400_v36, %v3218_v46  ;;  %v1364_v59 = vadd.f32 %v1363_v56, %v3229_v9  ;;  %v556_v46 = vadd.f32 %v555_v12, %v450_v39  ;;  %v563_v9 = vpop.f32.mrf.mxu1  ;;  %v570_v7 = vpack.c.bf16 %v544_v38, %v540_v6 }
 0x403   : > { %v1402_v55 = vadd.f32 %v1401_v0, %v3206_v27  ;;  %1520 = vmatmul.mubr.bf16.vlgmr.msra.gmra.mxu1 %v568_v11  ;;  %v1365_v60 = vadd.f32 %v1364_v59, %v3221_v32  ;;  %v573_v35 = vpack.c.bf16 %v556_v46, %v552_v14  ;;  %v460_v37 = vpop.permute.xlu1 %459  ;;  %v565_v2 = vpop.f32.mrf.mxu1 }
 0x404   : > { %1529 = vmatprep.mubr.bf16.mxu1 %v571_v19  ;;  %v566_v54 = vadd.f32 %v565_v2, %v460_v37  ;;  %v564_v25 = vadd.f32 %v563_v9, %v460_v37 }
 0x405   : > { %v1403_v44 = vadd.f32 %v1402_v55, %v3196_v21  ;;  %v1366_v63 = vadd.f32 %v1365_v60, %v3211_v23  ;;  %v550_v23 = vadd.f32 %v3252_v31, %v445_v52  ;;  %v560_v31 = vadd.f32 %v559_v28, %v455_v24  ;;  %v3354_v28 = vld [vmem:[%s2481_s15 + $0x20] sm:$0xff] }
 0x406   : > { %v1620_v60 = vsub.s32 1, %v1454_v5 }
 0x407   : > { %v1404_v62 = vadd.f32 %v1403_v44, %v3184_v43  ;;  %v1367_v27 = vadd.f32 %v1366_v63, %v3202_v48  ;;  %v562_v48 = vadd.f32 %v561_v47, %v455_v24  ;;  %v574_v30 = vpack.c.bf16 %v564_v25, %v560_v31  ;;  %v3334_v25 = vld [vmem:[%s2481_s15 + $0x38] sm:$0xff] }
 0x408   : > { %v1616_v47 = vsub.s32 0, %v1454_v5 }
 0x409   : > { %v1405_v32 = vadd.f32 %v1404_v62, %v3175_v49  ;;  %v1368_v51 = vadd.f32 %v1367_v27, %v3187_v50  ;;  %v572_v50 = vpack.c.bf16 %v554_v13, %v550_v23  ;;  %v575_v41 = vpack.c.bf16 %v566_v54, %v562_v48  ;;  %v3311_v13 = vld [vmem:[%s2481_s15 + $0x68] sm:$0xff]  ;;  %v3317_v54 = vld [vmem:[%s2481_s15 + $0x58] sm:$0xff] }
 0x40b   : > { %v1406_v18 = vadd.f32 %v1405_v32, %v3163_v26  ;;  %1530 = vmatmul.mubr.bf16.gmra.mxu1 %v570_v7  ;;  %v1369_v21 = vadd.f32 %v1368_v51, %v3166_v20  ;;  %v2379_v26 = vmov 1966171168  }
 0x40c   : > { %1539 = vmatprep.mubr.bf16.mxu1 %v573_v35  ;;  %v1451_v33 = vunpack.c.l.s4 %v2379_v26 }
 0x40d   : > { %v1407_v43 = vadd.f32 %v1406_v18, %v3169_v34  ;;  %v1370_v49 = vadd.f32 %v1369_v21, %v3611_v58  ;;  %v3308_v21 = vld [vmem:[%s2481_s15 + $0x70] sm:$0xff] }
 0x40e   : > { %v1452_v52 = vunpack.c.0.s8 %v1451_v33  ;;  %v3330_v33 = vld [vmem:[%s2481_s15 + $0x50] sm:$0xff] }
 0x40f   : > { %v1408_v42 = vrot.slane %v1407_v43, 4  ;;  %v1371_v22 = vrot.slane %v1370_v49, 4 }
 0x410   : > { %v1455_v17 = vsub.s32 %v1452_v52, %v1454_v5  ;;  %v3338_v52 = vld [vmem:[%s2481_s15 + $0x40] sm:$0xff] }
 0x411   : > { %v1409_v57 = vadd.f32 %v1408_v42, %v1407_v43  ;;  %v1372_v40 = vadd.f32 %v1371_v22, %v1370_v49  ;;  %v3314_v43 = vld [vmem:[%s2481_s15 + $0x78] sm:$0xff]  ;;  %v3320_v49 = vld [vmem:[%s2481_s15 + $0x60] sm:$0xff] }
 0x413   : > { %v1410_v45 = vrot.slane %v1409_v57, 2  ;;  %1540 = vmatmul.mubr.bf16.gmra.mxu1 %v572_v50  ;;  %v1373_v20 = vrot.slane %v1372_v40, 2  ;;  %v3324_v50 = vld [vmem:[%s2481_s15 + $0x48] sm:$0xff] }
 0x414   : > { %1549 = vmatprep.mubr.bf16.mxu1 %v575_v41 }
 0x415   : > { %v1411_v10 = vadd.f32 %v1410_v45, %v1409_v57  ;;  %v1374_v34 = vadd.f32 %v1373_v20, %v1372_v40 }
 0x417   : > { %v1412_v29 = vrot.slane %v1411_v10, 1  ;;  %v1375_v12 = vrot.slane %v1374_v34, 1 }
 0x419   : > { %v1413_v1 = vadd.f32 %v1412_v29, %v1411_v10  ;;  %v1376_v3 = vadd.f32 %v1375_v12, %v1374_v34  ;;  %v3342_v12 = vld [vmem:[%s2481_s15 + $0x28] sm:$0xff] }
 0x41b   : > { %1550 = vmatmul.mubr.bf16.gmra.mxu1 %v574_v30  ;;  %v1449_v61 = vcombine.low %v1376_v3, %v1413_v1 }
 0x41c   : > { %1802 = vmatprep.mubr.bf16.mxu1 %v3613_v16 }
 0x41d   : > { %v1456_v53 = vrot.slane %v1449_v61, %v1455_v17 }
 0x41f   : > { %v1463_v8 = vrot.slane %v1456_v53, %v1455_v17  ;;  %v3346_v17 = vld [vmem:[%s2481_s15 + $0x30] sm:$0xff] }
 0x421   : > { %v1465_v39 = vadd.f32 %v1463_v8, %v1446_v4  ;;  %v3350_v8 = vld [vmem:[%s2481_s15 + $0x18] sm:$0xff] }
 0x423   : > { %1470 = vst.msk [vmem:[#allocation3] sm:$0x3] %vm3101_vm2, %v1465_v39 }
 0x42a   : > { %v1611_v0 = vld [vmem:[#allocation3] sm:$0x3] }
 0x42b   : > { %v1612_v59 = vadd.f32 1e-09, %v1611_v0 }
 0x42d   : > { %v1617_v38 = vrot.slane %v1612_v59, %v1616_v47  ;;  %v1621_v44 = vrot.slane %v1612_v59, %v1620_v60  ;;  %v1643_v60 = vld [vmem:[%s2481_s15 + $0x8] sm:$0xff] }
 0x42f   : > { %2295 = vrcp.f32 %v1617_v38 }
 0x430   : > { %2297 = vrcp.f32 %v1621_v44 }
 0x43c   : > { %v2296_v35 = vpop.eup %2295 }
 0x43d   : > { %v2298_v51 = vpop.eup %2297 }
 0x4c3   : > { %v3301_v36 = vpop.f32.mrf.mxu1 }
 0x4c4   : > { %v1625_v44 = vmul.f32 %v2296_v35, %v3301_v36  ;;  %v2100_v36 = vld [vmem:[%s3478_s4 + $0x8] sm:$0xff]  }
 0x4c5   : > { %v3303_v56 = vpop.f32.mrf.mxu1 }
 0x4c6   : > { %v1627_v0 = vmul.f32 %v2298_v51, %v3303_v56 }
 0x4c7   : > { %v3305_v11 = vpop.f32.mrf.mxu1 }
 0x4c9   : > { %v1527_v19 = vpop.f32.mrf.mxu1 }
 0x4ca   : > { %v1629_v61 = vmul.f32 %v2298_v51, %v1527_v19  ;;  %v1628_v19 = vmul.f32 %v2296_v35, %v3305_v11 }
 0x4cb   : > { %v1531_v55 = vpop.f32.mrf.mxu1 }
 0x4cc   : > { %v1630_v4 = vmul.f32 %v2296_v35, %v1531_v55  ;;  %v1661_v38 = vsub.f32 %v3350_v8, %v1629_v61  ;;  %v1644_v55 = vld [vmem:[%s2481_s15 + $0x10] sm:$0xff] }
 0x4cd   : > { %v1533_v6 = vpop.f32.mrf.mxu1  ;;  %v1660_v56 = vsub.f32 %v1644_v55, %v1628_v19 }
 0x4ce   : > { %v1631_v15 = vmul.f32 %v2298_v51, %v1533_v6 }
 0x4cf   : > { %v1535_v24 = vpop.f32.mrf.mxu1 }
 0x4d0   : > { %v1632_v30 = vmul.f32 %v2296_v35, %v1535_v24  ;;  %v1663_v39 = vsub.f32 %v3342_v12, %v1631_v15  ;;  %v1662_v24 = vsub.f32 %v3354_v28, %v1630_v4 }
 0x4d1   : > { %v1537_v14 = vpop.f32.mrf.mxu1 }
 0x4d2   : > { %v1633_v45 = vmul.f32 %v2298_v51, %v1537_v14  ;;  %v1664_v47 = vsub.f32 %v3346_v17, %v1632_v30  ;;  %v1659_v14 = vsub.f32 %v1643_v60, %v1627_v0 }
 0x4d3   : > { %v1541_v46 = vpop.f32.mrf.mxu1 }
 0x4d4   : > { %v1634_v31 = vmul.f32 %v2296_v35, %v1541_v46  ;;  %v1665_v3 = vsub.f32 %v3334_v25, %v1633_v45  ;;  %v1642_v46 = vld [vmem:[%s2481_s15] sm:$0xff]  ;;  %s2380_s15 = smov [#allocation4]  }
 0x4d5   : > { %v1543_v63 = vpop.f32.mrf.mxu1  ;;  %s2303_s28 = sshll.u32 %s2380_s15, 4  ;;  %s2304_s28 = int_to_ptr.vmem [resolvable:$false] %s2303_s28 }
 0x4d6   : > { %v1635_v42 = vmul.f32 %v2298_v51, %v1543_v63  ;;  %v1666_v53 = vsub.f32 %v3338_v52, %v1634_v31  ;;  %v1677_v6 = vpack.c.bf16 %v1665_v3, %v1663_v39  ;;  %v1676_v63 = vpack.c.bf16 %v1664_v47, %v1662_v24  ;;  %s2305_s30 = scalar_lea.vmem %s2304_s28, 4096  ;;  %p2306_p1 = scmp.lt.s32.totalorder %s3422_s17, %s2304_s28 }
 0x4d7   : > { %v1545_v9 = vpop.f32.mrf.mxu1  ;;  %p2307_p2 = scmp.lt.s32.totalorder %s2305_s30, %s2299_s27 }
 0x4d8   : > { %v1636_v57 = vmul.f32 %v2296_v35, %v1545_v9  ;;  %v1667_v34 = vsub.f32 %v3324_v50, %v1635_v42  ;;  %v1675_v9 = vpack.c.bf16 %v1661_v38, %v1659_v14 }
 0x4d9   : > { %v1547_v62 = vpop.f32.mrf.mxu1  ;;  %p2308_p3 = por %p2307_p2, %p2306_p1 }
 0x4da   : > { %v1637_v23 = vmul.f32 %v2298_v51, %v1547_v62  ;;  %v1668_v29 = vsub.f32 %v3330_v33, %v1636_v57  ;;  %v1658_v62 = vsub.f32 %v1642_v46, %v1625_v44 }
 0x4db   : > { %v1551_v27 = vpop.f32.mrf.mxu1  ;;  %p2309_p5 = pnand %p2308_p3, %p2302_p0 }
 0x4dc   : > { %v1638_v48 = vmul.f32 %v2296_v35, %v1551_v27  ;;  %v1669_v26 = vsub.f32 %v3317_v54, %v1637_v23  ;;  %v1678_v59 = vpack.c.bf16 %v1668_v29, %v1666_v53  ;;  %v1674_v11 = vpack.c.bf16 %v1660_v56, %v1658_v62  ;;  %v2099_v27 = vld [vmem:[%s3478_s4] sm:$0xff]  }
 0x4dd   : > { %v1553_v7 = vpop.f32.mrf.mxu1 }
 0x4de   : > { %v1639_v2 = vmul.f32 %v2298_v51, %v1553_v7  ;;  %v1670_v20 = vsub.f32 %v3320_v49, %v1638_v48  ;;  %v1679_v1 = vpack.c.bf16 %v1669_v26, %v1667_v34  ;;  %v2101_v7 = vld [vmem:[%s3478_s4 + $0x10] sm:$0xff]   ;;  %v1706_v48 = vpop.permute.xlu0 %1705 }
 0x4df   : > { %v1555_v32 = vpop.f32.mrf.mxu1 }
 0x4e0   : > { %v1640_v18 = vmul.f32 %v2296_v35, %v1555_v32  ;;  %v1671_v41 = vsub.f32 %v3311_v13, %v1639_v2  ;;  %v2102_v32 = vld [vmem:[%s3478_s4 + $0x18] sm:$0xff]   ;;  %v1701_v35 = vpop.permute.xlu1 %1700 }
 0x4e1   : > { %v1557_v37 = vpop.f32.mrf.mxu1 }
 0x4e2   : > { %v1641_v58 = vmul.f32 %v2298_v51, %v1557_v37  ;;  %v1672_v22 = vsub.f32 %v3308_v21, %v1640_v18 }
 0x4e4   : > { %v1673_v40 = vsub.f32 %v3314_v43, %v1641_v58  ;;  %v1680_v5 = vpack.c.bf16 %v1672_v22, %v1670_v20  ;;  %v1711_v45 = vpop.permute.xlu1 %1710 }
 0x4e6   : > { %v1681_v10 = vpack.c.bf16 %v1673_v40, %v1671_v41 }
 0x4e8   : > { %1778 = vmatprep.subr.bf16.mxu1 %v1681_v10 }
 0x4e9   : > { %1779 = vmatpush1.bf16.msra.mxu1 %v1680_v5 }
 0x4ea   : > { %1780 = vmatprep.subr.bf16.mxu1 %v1679_v1  ;;  %v1716_v1 = vpop.permute.xlu0 %1715 }
 0x4ed   : > { %1781 = vmatpush1.bf16.msra.mxu1 %v1678_v59 }
 0x4ee   : > { %1782 = vmatprep.subr.bf16.mxu1 %v1677_v6  ;;  %v1726_v14 = vpop.permute.xlu0 %1725 }
 0x4f1   : > { %1783 = vmatpush1.bf16.msra.mxu1 %v1676_v63 }
 0x4f2   : > { %1784 = vmatprep.subr.bf16.mxu1 %v1675_v9 }
 0x4f5   : > { %1785 = vmatpush1.bf16.msra.mxu1 %v1674_v11 }
 0x4f8   : > { %2017 = vmatmul.mubr.msk.bf16.vlgmr.msra.gmra.mxu1 %vm298_vm0, %v2099_v27 }
 0x4f9   : > { %1812 = vmatprep.mubr.bf16.mxu1 %v3613_v16 }
 0x500   : > { %2018 = vmatmul.mubr.msk.bf16.gmra.mxu1 %vm298_vm0, %v2100_v36 }
 0x501   : > { %1822 = vmatprep.mubr.bf16.mxu1 %v3613_v16 }
 0x508   : > { %2019 = vmatmul.mubr.msk.bf16.gmra.mxu1 %vm298_vm0, %v2101_v7 }
 0x509   : > { %1832 = vmatprep.mubr.bf16.mxu1 %v3613_v16 }
 0x510   : > { %2020 = vmatmul.mubr.msk.bf16.gmra.mxu1 %vm298_vm0, %v2102_v32 }
 0x5b8   : > { %v1804_v51 = vpop.f32.mrf.mxu1 }
 0x5b9   : > { %v1805_v37 = vadd.f32 %v1804_v51, %v1701_v35 }
 0x5ba   : > { %v1806_v2 = vpop.f32.mrf.mxu1 }
 0x5bb   : > { %v1843_v18 = vmax.f32 %v1805_v37, 0.0  ;;  %v1807_v23 = vadd.f32 %v1806_v2, %v1701_v35  ;;  %v1736_v37 = vpop.permute.xlu0 %1735 }
 0x5bc   : > { %v1808_v58 = vpop.f32.mrf.mxu1 }
 0x5bd   : > { %v1859_v42 = vadd.f32 %v1843_v18, %v1642_v46  ;;  %v1844_v22 = vmax.f32 %v1807_v23, 0.0  ;;  %v1809_v16 = vadd.f32 %v1808_v58, %v1706_v48 }
 0x5be   : > { %v1810_v57 = vpop.f32.mrf.mxu1 }
 0x5bf   : > { %1875 = vst [vmem:[%s3387_s14] sm:$0xff] %v1859_v42  ;;  %v1860_v41 = vadd.f32 %v1844_v22, %v1643_v60  ;;  %v1845_v40 = vmax.f32 %v1809_v16, 0.0  ;;  %v1811_v26 = vadd.f32 %v1810_v57, %v1706_v48  ;;  %v1721_v60 = vpop.permute.xlu1 %1720 }
 0x5c0   : > { %v1814_v20 = vpop.f32.mrf.mxu1 }
 0x5c1   : > { %1876 = vst [vmem:[%s3387_s14 + $0x8] sm:$0xff] %v1860_v41  ;;  %v1861_v31 = vadd.f32 %v1845_v40, %v1644_v55  ;;  %v1846_v10 = vmax.f32 %v1811_v26, 0.0  ;;  %v1815_v34 = vadd.f32 %v1814_v20, %v1711_v45 }
 0x5c2   : > { %v1816_v15 = vpop.f32.mrf.mxu1 }
 0x5c3   : > { %1877 = vst [vmem:[%s3387_s14 + $0x10] sm:$0xff] %v1861_v31  ;;  %v1862_v5 = vadd.f32 %v1846_v10, %v3350_v8  ;;  %v1847_v29 = vmax.f32 %v1815_v34, 0.0  ;;  %v1817_v30 = vadd.f32 %v1816_v15, %v1711_v45  ;;  %v1731_v27 = vpop.permute.xlu1 %1730 }
 0x5c4   : > { %v1818_v3 = vpop.f32.mrf.mxu1 }
 0x5c5   : > { %1878 = vst [vmem:[%s3387_s14 + $0x18] sm:$0xff] %v1862_v5  ;;  %v1863_v61 = vadd.f32 %v1847_v29, %v3354_v28  ;;  %v1848_v53 = vmax.f32 %v1817_v30, 0.0  ;;  %v1819_v4 = vadd.f32 %v1818_v3, %v1716_v1 }
 0x5c6   : > { %v1820_v39 = vpop.f32.mrf.mxu1 }
 0x5c7   : > { %1879 = vst [vmem:[%s3387_s14 + $0x20] sm:$0xff] %v1863_v61  ;;  %v1864_v0 = vadd.f32 %v1848_v53, %v3342_v12  ;;  %v1849_v59 = vmax.f32 %v1819_v4, 0.0  ;;  %v1821_v47 = vadd.f32 %v1820_v39, %v1716_v1 }
 0x5c8   : > { %v1824_v8 = vpop.f32.mrf.mxu1 }
 0x5c9   : > { %1880 = vst [vmem:[%s3387_s14 + $0x28] sm:$0xff] %v1864_v0  ;;  %v1865_v19 = vadd.f32 %v1849_v59, %v3346_v17  ;;  %v1850_v6 = vmax.f32 %v1821_v47, 0.0  ;;  %v1825_v38 = vadd.f32 %v1824_v8, %v1721_v60 }
 0x5ca   : > { %v1826_v55 = vpop.f32.mrf.mxu1 }
 0x5cb   : > { %1881 = vst [vmem:[%s3387_s14 + $0x30] sm:$0xff] %v1865_v19  ;;  %v1866_v28 = vadd.f32 %v1850_v6, %v3334_v25  ;;  %v1851_v24 = vmax.f32 %v1825_v38, 0.0  ;;  %v1827_v44 = vadd.f32 %v1826_v55, %v1721_v60 }
 0x5cc   : > { %v1828_v12 = vpop.f32.mrf.mxu1 }
 0x5cd   : > { %1882 = vst [vmem:[%s3387_s14 + $0x38] sm:$0xff] %v1866_v28  ;;  %v1867_v46 = vadd.f32 %v1851_v24, %v3338_v52  ;;  %v1852_v63 = vmax.f32 %v1827_v44, 0.0  ;;  %v1829_v56 = vadd.f32 %v1828_v12, %v1726_v14 }
 0x5ce   : > { %v1830_v9 = vpop.f32.mrf.mxu1 }
 0x5cf   : > { %1883 = vst [vmem:[%s3387_s14 + $0x40] sm:$0xff] %v1867_v46  ;;  %v1868_v17 = vadd.f32 %v1852_v63, %v3324_v50  ;;  %v1853_v62 = vmax.f32 %v1829_v56, 0.0  ;;  %v1831_v11 = vadd.f32 %v1830_v9, %v1726_v14 }
 0x5d0   : > { %v1834_v25 = vpop.f32.mrf.mxu1 }
 0x5d1   : > { %1884 = vst [vmem:[%s3387_s14 + $0x48] sm:$0xff] %v1868_v17  ;;  %v1869_v36 = vadd.f32 %v1853_v62, %v3330_v33  ;;  %v1854_v7 = vmax.f32 %v1831_v11, 0.0  ;;  %v1835_v32 = vadd.f32 %v1834_v25, %v1731_v27 }
 0x5d2   : > { %v1836_v35 = vpop.f32.mrf.mxu1 }
 0x5d3   : > { %1885 = vst [vmem:[%s3387_s14 + $0x50] sm:$0xff] %v1869_v36  ;;  %v1870_v52 = vadd.f32 %v1854_v7, %v3317_v54  ;;  %v1855_v51 = vmax.f32 %v1835_v32, 0.0  ;;  %v1837_v50 = vadd.f32 %v1836_v35, %v1731_v27 }
 0x5d4   : > { %v1838_v2 = vpop.f32.mrf.mxu1 }
 0x5d5   : > { %1886 = vst [vmem:[%s3387_s14 + $0x58] sm:$0xff] %v1870_v52  ;;  %v1871_v18 = vadd.f32 %v1855_v51, %v3320_v49  ;;  %v1856_v23 = vmax.f32 %v1837_v50, 0.0  ;;  %v1839_v33 = vadd.f32 %v1838_v2, %v1736_v37 }
 0x5d6   : > { %v1840_v48 = vpop.f32.mrf.mxu1 }
 0x5d7   : > { %1887 = vst [vmem:[%s3387_s14 + $0x60] sm:$0xff] %v1871_v18  ;;  %v1872_v58 = vadd.f32 %v1856_v23, %v3311_v13  ;;  %v1857_v42 = vmax.f32 %v1839_v33, 0.0  ;;  %v1841_v54 = vadd.f32 %v1840_v48, %v1736_v37 }
 0x5d9   : > { %1888 = vst [vmem:[%s3387_s14 + $0x68] sm:$0xff] %v1872_v58  ;;  %v1873_v22 = vadd.f32 %v1857_v42, %v3308_v21  ;;  %v1858_v16 = vmax.f32 %v1841_v54, 0.0 }
 0x5db   : > { %1889 = vst [vmem:[%s3387_s14 + $0x70] sm:$0xff] %v1873_v22  ;;  %v1874_v13 = vadd.f32 %v1858_v16, %v3314_v43 }
 0x5dd   : > { %1890 = vst [vmem:[%s3387_s14 + $0x78] sm:$0xff] %v1874_v13 }
 0x5de   : > { %2312 = shalt.err (!%p2309_p5)
}
 0x5df   : > { %s2313_s8 = scalar_lea.hbm %s3420_s20, 2048  ;;  %s2317_s13 = scalar_lea.hbm %s3480_s6, 4096 }
 0x5e0   : > { %p2314_p6 = scmp.ne.s32.totalorder %s3420_s20, %s2313_s8  ;;  %p2318_p10 = scmp.lt.s32.totalorder %s3420_s20, %s3480_s6 }
 0x5e1   : > { %p2319_p11 = scmp.lt.s32.totalorder %s2317_s13, %s2313_s8 }
 0x5e2   : > { %p2315_p7 = pnand %p2314_p6, %p2458_p4 }
 0x5e3   : > { %p2320_p12 = por %p2319_p11, %p2318_p10 }
 0x5e4   : > { %p2316_p9 = pneg %p2315_p7 }
 0x5e6   : > { %p2321_p13 = pnand %p2320_p12, %p2316_p9 }
 0x5e8   : > { %2324 = shalt.err (!%p2321_p13)
}
 0x5e9   : > { %s2381_s18 = smov 256   ;;  %s2382_s19 = smov 16  }
 0x5ea   : > { %2032 = dma.vmem_to_hbm [thread:$0]  (%p2458_p4), %s3422_s17, 2048, %s3420_s20, %s3429_s24, %s2381_s18, %s2381_s18, %s2382_s19  }
 0x5eb PF: > { %p2038_p0 = scmp.ge.s32.totalorder %s2375_s26, 2  ;;  %s1920_s27 = sand.u32 1, %s2355_s21  }
 0x5ec   : > { %s1921_s15 = scalar_lea.sflag [#allocation5], %s1920_s27 }
 0x5ed   : > { %p2035_p1 = pnand %p2038_p0, %p2465_p8 }
 0x5ef   : > { %p2036_p2 = pneg %p2035_p1 }
 0x5f1   : > { %2350 = dma.done.wait (%p2036_p2), %s1921_s15, 2048  }
 0x5f2   : > { %2352 = vsyncadd (%p2036_p2), %s1921_s15, 4294965248  ;;  %s19_s26 = sadd.s32 1, %s2375_s26   ;;  %s3615_s21 = smov %s2359_s22 }
 0x5f3   : > { %p16_p3 = scmp.ge.s32.totalorder %s19_s26, 4   ;;  %s3616_s22 = smov %s2363_s23 }
 0x5f4   : > { %s3617_s23 = smov %s2471_s10  ;;  %s3618_s24 = smov %s2371_s25 }
 0x5f5   : > { %s3619_s25 = smov %s3621_s29  ;;  %18 = sbr.rel (!%p16_p3) target bundleno = 4 (0x4), region = 87 }
 0x5fa   :  { %1926 = vsyncpa [#allocation5], 1 }
 0x5fb   :  { %1928 = vsyncpa [#allocation5 + $0x1], 1 }

</bundles_post_ra>
